<compile_context>
chip_gen: v7x
topology: tpu7x:2x2x1
jax: 0.10.0
libtpu: 0.0.40
codegen_flags: <defaults>
</compile_context>

<pallas_src>
import functools

import jax
import jax.numpy as jnp
from jax.experimental import pallas as pl
from jax.experimental.pallas import tpu as pltpu


def _fpn_conv3x3_kernel(x_ref, x_top_ref, x_bot_ref, *rest,
                        TH, W, Cin, TCout, has_y, sh, sw, Wy):
    # Ref order: inputs (x, x_top, x_bot, [y, y_top, y_bot], w, b), output, scratch.
    if has_y:
        y_ref, y_top_ref, y_bot_ref, w_ref, b_ref, o_ref, xpad_ref, xcol_ref = rest
    else:
        w_ref, b_ref, o_ref, xpad_ref, xcol_ref = rest

    i = pl.program_id(1)           # row-tile index
    j = pl.program_id(2)           # Cout-tile index (innermost, "arbitrary")
    n_row = pl.num_programs(1)
    f32 = jnp.float32
    bf16 = jnp.bfloat16

    # ---------------- Tile assembly: once per (n, i); every Cout tile reuses it.
    @pl.when(j == 0)
    def _assemble():
        x_mid = x_ref[0].astype(f32)        # (TH, W, Cin)
        top = x_top_ref[0].astype(f32)      # (1, W, Cin)  image row i*TH - 1 (clamped)
        bot = x_bot_ref[0].astype(f32)      # (1, W, Cin)  image row i*TH + TH (clamped)

        if has_y:
            THy = TH // sh

            def up_w(a):  # nearest (floor) upsample along W: (R, Wy, Cin) -> (R, Wy*sw, Cin)
                r = a.shape[0]
                a = jnp.broadcast_to(a[:, :, None, :], (r, Wy, sw, Cin))
                return a.reshape(r, Wy * sw, Cin)

            y_mid = up_w(y_ref[0].astype(f32))                       # (THy, W, Cin)
            y_mid = jnp.broadcast_to(y_mid[:, None, :, :],           # nearest along H
                                     (THy, sh, W, Cin)).reshape(TH, W, Cin)
            x_mid = x_mid + y_mid
            top = top + up_w(y_top_ref[0].astype(f32))
            bot = bot + up_w(y_bot_ref[0].astype(f32))

        # Conv zero padding: halo rows that fall outside the image are zeros.
        top = jnp.where(i == 0, jnp.zeros_like(top), top)
        bot = jnp.where(i == n_row - 1, jnp.zeros_like(bot), bot)

        # Spatially padded (TH+2, W+2, Cin) tile (replaces a host-side jnp.pad
        # pass over the full activation).
        zcol = jnp.zeros((TH + 2, 1, Cin), f32)
        xpad_ref[:, 0:1, :] = zcol
        xpad_ref[:, W + 1:W + 2, :] = zcol
        xpad_ref[0:1, 1:W + 1, :] = top
        xpad_ref[TH + 1:TH + 2, 1:W + 1, :] = bot
        xpad_ref[1:TH + 1, 1:W + 1, :] = x_mid

        # im2col: fold all 9 taps into the matmul K dim.  One bf16 operand of
        # shape (TH*W, 9*Cin), built once and consumed by every Cout tile.
        for t in range(9):
            kh, kw = t // 3, t % 3
            win = xpad_ref[kh:kh + TH, kw:kw + W, :]      # (TH, W, Cin)
            xcol_ref[:, t * Cin:(t + 1) * Cin] = (
                win.reshape(TH * W, Cin).astype(bf16))

    # ---------------- Per-Cout-tile path: one MXU matmul (K = 9*Cin) + bias +
    # lane-dense store.  Weights stay resident; slice the TCout window here.
    coff = pl.multiple_of(j * TCout, 128)
    w_t = w_ref[:, pl.ds(coff, TCout)]                    # (9*Cin, TCout) bf16
    b_t = b_ref[:, pl.ds(coff, TCout)].astype(f32)        # (1, TCout)
    acc = jnp.dot(xcol_ref[...], w_t, preferred_element_type=f32) + b_t
    o_ref[0] = acc.reshape(TH, W, TCout).astype(o_ref.dtype)


def _pick_row_tile(H, sh, requested, vmem_est):
    if requested is not None:
        assert H % requested == 0 and requested % sh == 0, (H, sh, requested)
        return requested
    budget = 20 * 1024 * 1024   # keeps the working set comfortable on v7x (64 MiB) / v5e
    cands = [c for c in (32, 16, 8, 4, 2, 1) if H % c == 0 and c % sh == 0]
    if not cands:
        cands = [c for c in range(min(H, 64), 0, -1)
                 if H % c == 0 and c % sh == 0] or [H]
    for th in cands:
        if vmem_est(th) <= budget:
            return th
    return cands[-1]


def _conv3x3_pallas(x_nhwc, w_packed, b_pad, y_nhwc=None, *, row_tile=None, cout_tile=128):
    """Fused [x += nearest_up(y)] + 3x3 stride-1 pad-1 conv + bias, NHWC.

    x_nhwc:   (N, H, W, Cin) with W % 8 == 0.
    w_packed: (9*Cin, Cout_pad) bf16, row index = (kh*3+kw)*Cin + ci.
    b_pad:    (1, Cout_pad) f32.
    y_nhwc:   optional (N, Hy, Wy, Cin) with H % Hy == 0, W % Wy == 0.
    Returns (N, H, W, Cout_pad) in x's dtype.
    """
    N, H, W, Cin = x_nhwc.shape
    K9, Cout_pad = w_packed.shape
    assert K9 == 9 * Cin
    assert W % 8 == 0, "pad W to a multiple of 8 in the wrapper"
    TCout = min(cout_tile, Cout_pad)
    assert Cout_pad % TCout == 0

    has_y = y_nhwc is not None
    if has_y:
        Hy, Wy = y_nhwc.shape[1], y_nhwc.shape[2]
        sh, sw = H // Hy, W // Wy
        assert H == Hy * sh and W == Wy * sw
    else:
        Hy, Wy, sh, sw = 1, 1, 1, 1

    x_isz = jnp.dtype(x_nhwc.dtype).itemsize
    y_isz = jnp.dtype(y_nhwc.dtype).itemsize if has_y else 4
    out_isz = x_isz

    def vmem_est(th):
        thy = max(th // sh, 1)
        est = 2 * (th * W * Cin + 2 * W * Cin) * x_isz            # x tile + halos (dbl-buf)
        if has_y:
            est += 2 * (thy * Wy * Cin + 2 * Wy * Cin) * y_isz    # y tile + halos (dbl-buf)
        est += 2 * K9 * Cout_pad * 2 + 2 * Cout_pad * 4           # resident weights + bias
        est += 2 * th * W * TCout * out_isz                       # out tile (dbl-buf)
        est += (th + 2) * (W + 2) * Cin * 4                       # padded-tile scratch (f32)
        est += th * W * K9 * 2                                    # im2col scratch (bf16)
        est += th * W * TCout * 4                                 # matmul result headroom
        return est

    TH = _pick_row_tile(H, sh, row_tile, vmem_est)
    assert H % TH == 0 and TH % sh == 0
    THy = TH // sh
    grid = (N, H // TH, Cout_pad // TCout)

    # x appears three times: the row tile plus two clamped 1-row halo views.
    in_specs = [
        pl.BlockSpec((1, TH, W, Cin), lambda n, i, j: (n, i, 0, 0)),
        pl.BlockSpec((1, 1, W, Cin),
                     lambda n, i, j: (n, jnp.maximum(i * TH - 1, 0), 0, 0)),
        pl.BlockSpec((1, 1, W, Cin),
                     lambda n, i, j: (n, jnp.minimum(i * TH + TH, H - 1), 0, 0)),
    ]
    inputs = [x_nhwc, x_nhwc, x_nhwc]
    if has_y:
        in_specs += [
            pl.BlockSpec((1, THy, Wy, Cin), lambda n, i, j: (n, i, 0, 0)),
            pl.BlockSpec((1, 1, Wy, Cin),
                         lambda n, i, j: (n, jnp.maximum(i * THy - 1, 0), 0, 0)),
            pl.BlockSpec((1, 1, Wy, Cin),
                         lambda n, i, j: (n, jnp.minimum(i * THy + THy, Hy - 1), 0, 0)),
        ]
        inputs += [y_nhwc, y_nhwc, y_nhwc]
    # Weights / bias: grid-invariant blocks -> DMA'd once, stay resident.
    in_specs += [
        pl.BlockSpec((K9, Cout_pad), lambda n, i, j: (0, 0)),
        pl.BlockSpec((1, Cout_pad), lambda n, i, j: (0, 0)),
    ]
    inputs += [w_packed, b_pad]

    kernel = functools.partial(
        _fpn_conv3x3_kernel, TH=TH, W=W, Cin=Cin, TCout=TCout,
        has_y=has_y, sh=sh, sw=sw, Wy=Wy)

    # Explicit VMEM budget with headroom (v5e's default scoped limit is small;
    # v7x only has 64 MiB physical per core).
    vmem_limit = int(min(max(vmem_est(TH) * 7 // 4 + (2 << 20), 16 << 20), 64 << 20))

    return pl.pallas_call(
        kernel,
        out_shape=jax.ShapeDtypeStruct((N, H, W, Cout_pad), x_nhwc.dtype),
        grid_spec=pltpu.PrefetchScalarGridSpec(
            num_scalar_prefetch=0,
            grid=grid,
            in_specs=in_specs,
            out_specs=pl.BlockSpec((1, TH, W, TCout),
                                   lambda n, i, j: (n, i, 0, j)),
            scratch_shapes=[
                pltpu.VMEM((TH + 2, W + 2, Cin), jnp.float32),   # padded tile
                pltpu.VMEM((TH * W, K9), jnp.bfloat16),          # im2col operand
            ],
        ),
        compiler_params=pltpu.CompilerParams(
            # (n, i) tiles are independent -> parallel (megacore);
            # the Cout sweep stays on one core so assembly is done once per (n, i).
            dimension_semantics=("parallel", "parallel", "arbitrary"),
            vmem_limit_bytes=vmem_limit),
    )(*inputs)


def _upsample_nearest_nchw(y, out_hw):
    """PyTorch F.interpolate(..., mode='nearest'): src = floor(dst * in/out)."""
    Hin, Win = y.shape[2], y.shape[3]
    Hout, Wout = out_hw
    h_idx = (jnp.arange(Hout) * Hin // Hout).astype(jnp.int32)
    w_idx = (jnp.arange(Wout) * Win // Wout).astype(jnp.int32)
    return y[:, :, h_idx, :][:, :, :, w_idx]


def fpn_prediction_block(x, w, b, y=None, mode="nearest", row_tile=None, cout_tile=None):
    """x: (N, Cin, H, W) NCHW. w: (Cout, Cin, 3, 3) OIHW. b: (Cout,)."""
    assert mode == "nearest", "only 'nearest' implemented"
    # TODO(synk): 'bilinear' interpolate mode (align_corners=False) is not implemented.
    N, Cin, H, W = x.shape
    Cout = w.shape[0]
    Cout_pad = -(-Cout // 128) * 128        # lane-dense output stores
    if cout_tile is None:
        # 256-wide Cout tiles fill the 2x256x256 MXU on v6e/v7x; harmless on v5e.
        cout_tile = 256 if (Cout_pad >= 256 and Cout_pad % 256 == 0) else 128

    # Host-side packing of the (tiny) parameters only; activations are NOT
    # pre-padded / pre-upsampled on the host (those passes are fused in-kernel).
    # Row order (kh*3+kw)*Cin + ci matches the kernel's im2col K layout.
    w_packed = jnp.transpose(w, (2, 3, 1, 0)).reshape(9 * Cin, Cout)
    w_packed = jnp.pad(w_packed, ((0, 0), (0, Cout_pad - Cout))).astype(jnp.bfloat16)
    b_pad = jnp.pad(b, (0, Cout_pad - Cout)).reshape(1, Cout_pad).astype(jnp.float32)

    # NCHW -> NHWC (channels on the lane axis).
    x_nhwc = jnp.transpose(x, (0, 2, 3, 1))

    fuse_y = (y is not None and H % y.shape[2] == 0 and W % y.shape[3] == 0
              and W % 8 == 0)
    if y is not None and not fuse_y:
        # TODO(synk): non-integer-scale nearest upsample (or W % 8 != 0) is added host-side.
        x_nhwc = x_nhwc + jnp.transpose(_upsample_nearest_nchw(y, (H, W)), (0, 2, 3, 1))
    y_nhwc = jnp.transpose(y, (0, 2, 3, 1)) if fuse_y else None

    Wk = W
    if W % 8 != 0:
        # Pad width to a sublane multiple with zeros; the extra columns coincide
        # with the conv's own zero padding for the last valid column, so
        # output[:, :, :, :W] is exact and the padded columns are sliced off.
        Wk = -(-W // 8) * 8
        x_nhwc = jnp.pad(x_nhwc, ((0, 0), (0, 0), (0, Wk - W), (0, 0)))

    out_nhwc = _conv3x3_pallas(x_nhwc, w_packed, b_pad, y_nhwc,
                               row_tile=row_tile, cout_tile=cout_tile)
    return jnp.transpose(out_nhwc[:, :, :W, :Cout], (0, 3, 1, 2))   # back to NCHW


def _reference(x, w, b, y=None):
    if y is not None:
        x = x + _upsample_nearest_nchw(y, (x.shape[2], x.shape[3]))
    out = jax.lax.conv_general_dilated(
        x, w, window_strides=(1, 1), padding=((1, 1), (1, 1)),
        dimension_numbers=("NCHW", "OIHW", "NCHW"))
    return out + b.reshape(1, -1, 1, 1)


if __name__ == "__main__":
    key = jax.random.PRNGKey(0)
    k1, k2, k3, k4, k5, k6 = jax.random.split(key, 6)

    N, Cin, Cout = 2, 4, 8
    H, W = 16, 16
    Hy, Wy = 8, 8   # coarser FPN level, upsampled 2x to (H, W)

    x = jax.random.normal(k1, (N, Cin, H, W), jnp.float32)
    y = jax.random.normal(k2, (N, Cin, Hy, Wy), jnp.float32)
    w = jax.random.normal(k3, (Cout, Cin, 3, 3), jnp.float32) * 0.1
    b = jax.random.normal(k4, (Cout,), jnp.float32) * 0.1

    # 1) With skip input y (fused nearest-upsample + add + pad + conv).
    #    row_tile=8 -> 2 row tiles so the halo/boundary logic is exercised.
    out = jax.block_until_ready(fpn_prediction_block(x, w, b, y=y, row_tile=8))
    ref = _reference(x, w, b, y=y)
    assert out.shape == (N, Cout, H, W)
    assert jnp.allclose(out, ref, atol=2e-2, rtol=2e-2), \
        float(jnp.max(jnp.abs(out - ref)))

    # 2) Without y (plain fused pad + conv).
    out2 = jax.block_until_ready(fpn_prediction_block(x, w, b))
    ref2 = _reference(x, w, b)
    assert jnp.allclose(out2, ref2, atol=2e-2, rtol=2e-2), \
        float(jnp.max(jnp.abs(out2 - ref2)))

    # 3) Wider output (Cout=320 -> Cout_pad=384, 3 Cout tiles of 128): exercises
    #    the j>0 reuse of the persisted im2col operand (assembly hoisting).
    Cout3 = 320
    w3 = jax.random.normal(k5, (Cout3, Cin, 3, 3), jnp.float32) * 0.1
    b3 = jax.random.normal(k6, (Cout3,), jnp.float32) * 0.1
    out3 = jax.block_until_ready(fpn_prediction_block(x, w3, b3, y=y))
    ref3 = _reference(x, w3, b3, y=y)
    assert out3.shape == (N, Cout3, H, W)
    assert jnp.allclose(out3, ref3, atol=2e-2, rtol=2e-2), \
        float(jnp.max(jnp.abs(out3 - ref3)))

    print("KERNEL_OK")
</pallas_src>

<mosaic_0001>
module attributes {stable_mosaic.version = 11 : i64} {
  func.func @_fpn_conv3x3_kernel(%arg0: i32, %arg1: i32, %arg2: i32, %arg3: memref<1x8x16x4xf32, #tpu.memory_space<vmem>>, %arg4: memref<1x1x16x4xf32, #tpu.memory_space<vmem>>, %arg5: memref<1x1x16x4xf32, #tpu.memory_space<vmem>>, %arg6: memref<1x4x8x4xf32, #tpu.memory_space<vmem>>, %arg7: memref<1x1x8x4xf32, #tpu.memory_space<vmem>>, %arg8: memref<1x1x8x4xf32, #tpu.memory_space<vmem>>, %arg9: memref<36x128xbf16, #tpu.memory_space<vmem>>, %arg10: memref<1x128xf32, #tpu.memory_space<vmem>>, %arg11: memref<1x8x16x128xf32, #tpu.memory_space<vmem>>, %arg12: memref<10x18x4xf32, #tpu.memory_space<vmem>>, %arg13: memref<128x36xbf16, #tpu.memory_space<vmem>>) attributes {dimension_semantics = [#tpu.dimension_semantics<parallel>, #tpu.dimension_semantics<parallel>, #tpu.dimension_semantics<arbitrary>], iteration_bounds = array<i64: 2, 2, 1>, scalar_prefetch = 0 : i64, scratch_operands = 2 : i64, tpu.core_type = #tpu.core_type<tc>, window_params = [{transform_indices = @transform_0, window_bounds = array<i64: 1, 8, 16, 4>}, {transform_indices = @transform_1, window_bounds = array<i64: 1, 1, 16, 4>}, {transform_indices = @transform_2, window_bounds = array<i64: 1, 1, 16, 4>}, {transform_indices = @transform_3, window_bounds = array<i64: 1, 4, 8, 4>}, {transform_indices = @transform_4, window_bounds = array<i64: 1, 1, 8, 4>}, {transform_indices = @transform_5, window_bounds = array<i64: 1, 1, 8, 4>}, {pipeline_mode = #tpu.pipeline_mode<synchronous>, transform_indices = @transform_6, window_bounds = array<i64: 36, 128>}, {pipeline_mode = #tpu.pipeline_mode<synchronous>, transform_indices = @transform_7, window_bounds = array<i64: 1, 128>}, {transform_indices = @transform_8, window_bounds = array<i64: 1, 8, 16, 128>}]} {
    %c0_i32 = arith.constant 0 : i32
    %0 = arith.cmpi eq, %arg2, %c0_i32 : i32
    %1 = arith.extui %0 : i1 to i32
    %c0_i32_0 = arith.constant 0 : i32
    %2 = arith.cmpi ne, %1, %c0_i32_0 : i32
    scf.if %2 {
      %c0_8 = arith.constant 0 : index
      %c0_9 = arith.constant 0 : index
      %c0_10 = arith.constant 0 : index
      %c0_11 = arith.constant 0 : index
      %17 = vector.load %arg3[%c0_8, %c0_9, %c0_10, %c0_11] : memref<1x8x16x4xf32, #tpu.memory_space<vmem>>, vector<1x8x16x4xf32>
      %18 = vector.shape_cast %17 : vector<1x8x16x4xf32> to vector<8x16x4xf32>
      %c0_12 = arith.constant 0 : index
      %c0_13 = arith.constant 0 : index
      %c0_14 = arith.constant 0 : index
      %c0_15 = arith.constant 0 : index
      %19 = vector.load %arg4[%c0_12, %c0_13, %c0_14, %c0_15] : memref<1x1x16x4xf32, #tpu.memory_space<vmem>>, vector<1x1x16x4xf32>
      %20 = vector.shape_cast %19 : vector<1x1x16x4xf32> to vector<1x16x4xf32>
      %c0_16 = arith.constant 0 : index
      %c0_17 = arith.constant 0 : index
      %c0_18 = arith.constant 0 : index
      %c0_19 = arith.constant 0 : index
      %21 = vector.load %arg5[%c0_16, %c0_17, %c0_18, %c0_19] : memref<1x1x16x4xf32, #tpu.memory_space<vmem>>, vector<1x1x16x4xf32>
      %22 = vector.shape_cast %21 : vector<1x1x16x4xf32> to vector<1x16x4xf32>
      %c0_20 = arith.constant 0 : index
      %c0_21 = arith.constant 0 : index
      %c0_22 = arith.constant 0 : index
      %c0_23 = arith.constant 0 : index
      %23 = vector.load %arg6[%c0_20, %c0_21, %c0_22, %c0_23] : memref<1x4x8x4xf32, #tpu.memory_space<vmem>>, vector<1x4x8x4xf32>
      %24 = vector.shape_cast %23 : vector<1x4x8x4xf32> to vector<4x8x4xf32>
      %25 = vector.shape_cast %24 : vector<4x8x4xf32> to vector<4x8x1x4xf32>
      %26 = vector.shape_cast %25 : vector<4x8x1x4xf32> to vector<4x8x1x4xf32>
      %27 = vector.broadcast %26 : vector<4x8x1x4xf32> to vector<4x8x2x4xf32>
      %28 = vector.shape_cast %27 : vector<4x8x2x4xf32> to vector<4x16x4xf32>
      %29 = vector.shape_cast %28 : vector<4x16x4xf32> to vector<4x1x16x4xf32>
      %30 = vector.shape_cast %29 : vector<4x1x16x4xf32> to vector<4x1x16x4xf32>
      %31 = vector.broadcast %30 : vector<4x1x16x4xf32> to vector<4x2x16x4xf32>
      %32 = vector.shape_cast %31 : vector<4x2x16x4xf32> to vector<8x16x4xf32>
      %33 = arith.addf %18, %32 : vector<8x16x4xf32>
      %c0_24 = arith.constant 0 : index
      %c0_25 = arith.constant 0 : index
      %c0_26 = arith.constant 0 : index
      %c0_27 = arith.constant 0 : index
      %34 = vector.load %arg7[%c0_24, %c0_25, %c0_26, %c0_27] : memref<1x1x8x4xf32, #tpu.memory_space<vmem>>, vector<1x1x8x4xf32>
      %35 = vector.shape_cast %34 : vector<1x1x8x4xf32> to vector<1x8x4xf32>
      %36 = vector.shape_cast %35 : vector<1x8x4xf32> to vector<1x8x1x4xf32>
      %37 = vector.shape_cast %36 : vector<1x8x1x4xf32> to vector<1x8x1x4xf32>
      %38 = vector.broadcast %37 : vector<1x8x1x4xf32> to vector<1x8x2x4xf32>
      %39 = vector.shape_cast %38 : vector<1x8x2x4xf32> to vector<1x16x4xf32>
      %40 = arith.addf %20, %39 : vector<1x16x4xf32>
      %c0_28 = arith.constant 0 : index
      %c0_29 = arith.constant 0 : index
      %c0_30 = arith.constant 0 : index
      %c0_31 = arith.constant 0 : index
      %41 = vector.load %arg8[%c0_28, %c0_29, %c0_30, %c0_31] : memref<1x1x8x4xf32, #tpu.memory_space<vmem>>, vector<1x1x8x4xf32>
      %42 = vector.shape_cast %41 : vector<1x1x8x4xf32> to vector<1x8x4xf32>
      %43 = vector.shape_cast %42 : vector<1x8x4xf32> to vector<1x8x1x4xf32>
      %44 = vector.shape_cast %43 : vector<1x8x1x4xf32> to vector<1x8x1x4xf32>
      %45 = vector.broadcast %44 : vector<1x8x1x4xf32> to vector<1x8x2x4xf32>
      %46 = vector.shape_cast %45 : vector<1x8x2x4xf32> to vector<1x16x4xf32>
      %47 = arith.addf %22, %46 : vector<1x16x4xf32>
      %c0_i32_32 = arith.constant 0 : i32
      %48 = arith.cmpi eq, %arg1, %c0_i32_32 : i32
      %cst_33 = arith.constant 0.000000e+00 : f32
      %49 = vector.broadcast %cst_33 : f32 to vector<1x16x4xf32>
      %50 = arith.select %48, %49, %40 : vector<1x16x4xf32>
      %c1_i32 = arith.constant 1 : i32
      %51 = arith.cmpi eq, %arg1, %c1_i32 : i32
      %cst_34 = arith.constant 0.000000e+00 : f32
      %52 = vector.broadcast %cst_34 : f32 to vector<1x16x4xf32>
      %53 = arith.select %51, %52, %47 : vector<1x16x4xf32>
      %cst_35 = arith.constant 0.000000e+00 : f32
      %54 = vector.broadcast %cst_35 : f32 to vector<10x1x4xf32>
      %c0_36 = arith.constant 0 : index
      %c0_37 = arith.constant 0 : index
      %c0_38 = arith.constant 0 : index
      %55 = vector.load %arg12[%c0_36, %c0_37, %c0_38] : memref<10x18x4xf32, #tpu.memory_space<vmem>>, vector<10x1x4xf32>
      tpu.vector_store %arg12[%c0_36, %c0_37, %c0_38], %54 {strides = array<i32>} : memref<10x18x4xf32, #tpu.memory_space<vmem>>, vector<10x1x4xf32>,
      %c0_39 = arith.constant 0 : index
      %c17 = arith.constant 17 : index
      %c0_40 = arith.constant 0 : index
      %56 = vector.load %arg12[%c0_39, %c17, %c0_40] : memref<10x18x4xf32, #tpu.memory_space<vmem>>, vector<10x1x4xf32>
      tpu.vector_store %arg12[%c0_39, %c17, %c0_40], %54 {strides = array<i32>} : memref<10x18x4xf32, #tpu.memory_space<vmem>>, vector<10x1x4xf32>,
      %c0_41 = arith.constant 0 : index
      %c1 = arith.constant 1 : index
      %c0_42 = arith.constant 0 : index
      %57 = vector.load %arg12[%c0_41, %c1, %c0_42] : memref<10x18x4xf32, #tpu.memory_space<vmem>>, vector<1x16x4xf32>
      tpu.vector_store %arg12[%c0_41, %c1, %c0_42], %50 {strides = array<i32>} : memref<10x18x4xf32, #tpu.memory_space<vmem>>, vector<1x16x4xf32>,
      %c9 = arith.constant 9 : index
      %c1_43 = arith.constant 1 : index
      %c0_44 = arith.constant 0 : index
      %58 = vector.load %arg12[%c9, %c1_43, %c0_44] : memref<10x18x4xf32, #tpu.memory_space<vmem>>, vector<1x16x4xf32>
      tpu.vector_store %arg12[%c9, %c1_43, %c0_44], %53 {strides = array<i32>} : memref<10x18x4xf32, #tpu.memory_space<vmem>>, vector<1x16x4xf32>,
      %c1_45 = arith.constant 1 : index
      %c1_46 = arith.constant 1 : index
      %c0_47 = arith.constant 0 : index
      %59 = vector.load %arg12[%c1_45, %c1_46, %c0_47] : memref<10x18x4xf32, #tpu.memory_space<vmem>>, vector<8x16x4xf32>
      tpu.vector_store %arg12[%c1_45, %c1_46, %c0_47], %33 {strides = array<i32>} : memref<10x18x4xf32, #tpu.memory_space<vmem>>, vector<8x16x4xf32>,
      %c0_48 = arith.constant 0 : index
      %c0_49 = arith.constant 0 : index
      %c0_50 = arith.constant 0 : index
      %60 = vector.load %arg12[%c0_48, %c0_49, %c0_50] : memref<10x18x4xf32, #tpu.memory_space<vmem>>, vector<8x16x4xf32>
      %61 = vector.shape_cast %60 : vector<8x16x4xf32> to vector<128x4xf32>
      %62 = arith.truncf %61 : vector<128x4xf32> to vector<128x4xbf16>
      %c0_51 = arith.constant 0 : index
      %c0_52 = arith.constant 0 : index
      %63 = vector.load %arg13[%c0_51, %c0_52] : memref<128x36xbf16, #tpu.memory_space<vmem>>, vector<128x4xbf16>
      tpu.vector_store %arg13[%c0_51, %c0_52], %62 {strides = array<i32>} : memref<128x36xbf16, #tpu.memory_space<vmem>>, vector<128x4xbf16>,
      %c0_53 = arith.constant 0 : index
      %c1_54 = arith.constant 1 : index
      %c0_55 = arith.constant 0 : index
      %64 = vector.load %arg12[%c0_53, %c1_54, %c0_55] : memref<10x18x4xf32, #tpu.memory_space<vmem>>, vector<8x16x4xf32>
      %65 = vector.shape_cast %64 : vector<8x16x4xf32> to vector<128x4xf32>
      %66 = arith.truncf %65 : vector<128x4xf32> to vector<128x4xbf16>
      %c0_56 = arith.constant 0 : index
      %c4 = arith.constant 4 : index
      %67 = vector.load %arg13[%c0_56, %c4] : memref<128x36xbf16, #tpu.memory_space<vmem>>, vector<128x4xbf16>
      tpu.vector_store %arg13[%c0_56, %c4], %66 {strides = array<i32>} : memref<128x36xbf16, #tpu.memory_space<vmem>>, vector<128x4xbf16>,
      %c0_57 = arith.constant 0 : index
      %c2 = arith.constant 2 : index
      %c0_58 = arith.constant 0 : index
      %68 = vector.load %arg12[%c0_57, %c2, %c0_58] : memref<10x18x4xf32, #tpu.memory_space<vmem>>, vector<8x16x4xf32>
      %69 = vector.shape_cast %68 : vector<8x16x4xf32> to vector<128x4xf32>
      %70 = arith.truncf %69 : vector<128x4xf32> to vector<128x4xbf16>
      %c0_59 = arith.constant 0 : index
      %c8 = arith.constant 8 : index
      %71 = vector.load %arg13[%c0_59, %c8] : memref<128x36xbf16, #tpu.memory_space<vmem>>, vector<128x4xbf16>
      tpu.vector_store %arg13[%c0_59, %c8], %70 {strides = array<i32>} : memref<128x36xbf16, #tpu.memory_space<vmem>>, vector<128x4xbf16>,
      %c1_60 = arith.constant 1 : index
      %c0_61 = arith.constant 0 : index
      %c0_62 = arith.constant 0 : index
      %72 = vector.load %arg12[%c1_60, %c0_61, %c0_62] : memref<10x18x4xf32, #tpu.memory_space<vmem>>, vector<8x16x4xf32>
      %73 = vector.shape_cast %72 : vector<8x16x4xf32> to vector<128x4xf32>
      %74 = arith.truncf %73 : vector<128x4xf32> to vector<128x4xbf16>
      %c0_63 = arith.constant 0 : index
      %c12 = arith.constant 12 : index
      %75 = vector.load %arg13[%c0_63, %c12] : memref<128x36xbf16, #tpu.memory_space<vmem>>, vector<128x4xbf16>
      tpu.vector_store %arg13[%c0_63, %c12], %74 {strides = array<i32>} : memref<128x36xbf16, #tpu.memory_space<vmem>>, vector<128x4xbf16>,
      %c1_64 = arith.constant 1 : index
      %c1_65 = arith.constant 1 : index
      %c0_66 = arith.constant 0 : index
      %76 = vector.load %arg12[%c1_64, %c1_65, %c0_66] : memref<10x18x4xf32, #tpu.memory_space<vmem>>, vector<8x16x4xf32>
      %77 = vector.shape_cast %76 : vector<8x16x4xf32> to vector<128x4xf32>
      %78 = arith.truncf %77 : vector<128x4xf32> to vector<128x4xbf16>
      %c0_67 = arith.constant 0 : index
      %c16 = arith.constant 16 : index
      %79 = vector.load %arg13[%c0_67, %c16] : memref<128x36xbf16, #tpu.memory_space<vmem>>, vector<128x4xbf16>
      tpu.vector_store %arg13[%c0_67, %c16], %78 {strides = array<i32>} : memref<128x36xbf16, #tpu.memory_space<vmem>>, vector<128x4xbf16>,
      %c1_68 = arith.constant 1 : index
      %c2_69 = arith.constant 2 : index
      %c0_70 = arith.constant 0 : index
      %80 = vector.load %arg12[%c1_68, %c2_69, %c0_70] : memref<10x18x4xf32, #tpu.memory_space<vmem>>, vector<8x16x4xf32>
      %81 = vector.shape_cast %80 : vector<8x16x4xf32> to vector<128x4xf32>
      %82 = arith.truncf %81 : vector<128x4xf32> to vector<128x4xbf16>
      %c0_71 = arith.constant 0 : index
      %c20 = arith.constant 20 : index
      %83 = vector.load %arg13[%c0_71, %c20] : memref<128x36xbf16, #tpu.memory_space<vmem>>, vector<128x4xbf16>
      tpu.vector_store %arg13[%c0_71, %c20], %82 {strides = array<i32>} : memref<128x36xbf16, #tpu.memory_space<vmem>>, vector<128x4xbf16>,
      %c2_72 = arith.constant 2 : index
      %c0_73 = arith.constant 0 : index
      %c0_74 = arith.constant 0 : index
      %84 = vector.load %arg12[%c2_72, %c0_73, %c0_74] : memref<10x18x4xf32, #tpu.memory_space<vmem>>, vector<8x16x4xf32>
      %85 = vector.shape_cast %84 : vector<8x16x4xf32> to vector<128x4xf32>
      %86 = arith.truncf %85 : vector<128x4xf32> to vector<128x4xbf16>
      %c0_75 = arith.constant 0 : index
      %c24 = arith.constant 24 : index
      %87 = vector.load %arg13[%c0_75, %c24] : memref<128x36xbf16, #tpu.memory_space<vmem>>, vector<128x4xbf16>
      tpu.vector_store %arg13[%c0_75, %c24], %86 {strides = array<i32>} : memref<128x36xbf16, #tpu.memory_space<vmem>>, vector<128x4xbf16>,
      %c2_76 = arith.constant 2 : index
      %c1_77 = arith.constant 1 : index
      %c0_78 = arith.constant 0 : index
      %88 = vector.load %arg12[%c2_76, %c1_77, %c0_78] : memref<10x18x4xf32, #tpu.memory_space<vmem>>, vector<8x16x4xf32>
      %89 = vector.shape_cast %88 : vector<8x16x4xf32> to vector<128x4xf32>
      %90 = arith.truncf %89 : vector<128x4xf32> to vector<128x4xbf16>
      %c0_79 = arith.constant 0 : index
      %c28 = arith.constant 28 : index
      %91 = vector.load %arg13[%c0_79, %c28] : memref<128x36xbf16, #tpu.memory_space<vmem>>, vector<128x4xbf16>
      tpu.vector_store %arg13[%c0_79, %c28], %90 {strides = array<i32>} : memref<128x36xbf16, #tpu.memory_space<vmem>>, vector<128x4xbf16>,
      %c2_80 = arith.constant 2 : index
      %c2_81 = arith.constant 2 : index
      %c0_82 = arith.constant 0 : index
      %92 = vector.load %arg12[%c2_80, %c2_81, %c0_82] : memref<10x18x4xf32, #tpu.memory_space<vmem>>, vector<8x16x4xf32>
      %93 = vector.shape_cast %92 : vector<8x16x4xf32> to vector<128x4xf32>
      %94 = arith.truncf %93 : vector<128x4xf32> to vector<128x4xbf16>
      %c0_83 = arith.constant 0 : index
      %c32 = arith.constant 32 : index
      %95 = vector.load %arg13[%c0_83, %c32] : memref<128x36xbf16, #tpu.memory_space<vmem>>, vector<128x4xbf16>
      tpu.vector_store %arg13[%c0_83, %c32], %94 {strides = array<i32>} : memref<128x36xbf16, #tpu.memory_space<vmem>>, vector<128x4xbf16>,
    } else {
    }
    %c128_i32 = arith.constant 128 : i32
    %3 = arith.muli %arg2, %c128_i32 : i32
    %4 = tpu.assume_multiple %3, 128 : i32
    %c0 = arith.constant 0 : index
    %5 = arith.index_cast %4 : i32 to index
    %6 = vector.load %arg9[%c0, %5] : memref<36x128xbf16, #tpu.memory_space<vmem>>, vector<36x128xbf16>
    %c0_1 = arith.constant 0 : index
    %7 = arith.index_cast %4 : i32 to index
    %8 = vector.load %arg10[%c0_1, %7] : memref<1x128xf32, #tpu.memory_space<vmem>>, vector<1x128xf32>
    %c0_2 = arith.constant 0 : index
    %c0_3 = arith.constant 0 : index
    %9 = vector.load %arg13[%c0_2, %c0_3] : memref<128x36xbf16, #tpu.memory_space<vmem>>, vector<128x36xbf16>
    %cst = arith.constant dense<0.000000e+00> : vector<128x128xf32>
    %10 = tpu.matmul %9, %6, %cst {dimension_numbers = #tpu.dot_dimension_numbers<[1], [0], [0], [1], [0, 0, 1, 1], [], []>} : vector<128x36xbf16>, vector<36x128xbf16>, vector<128x128xf32> -> vector<128x128xf32>
    %11 = vector.broadcast %8 : vector<1x128xf32> to vector<128x128xf32>
    %12 = arith.addf %10, %11 : vector<128x128xf32>
    %13 = vector.shape_cast %12 : vector<128x128xf32> to vector<8x16x128xf32>
    %c0_4 = arith.constant 0 : index
    %c0_5 = arith.constant 0 : index
    %c0_6 = arith.constant 0 : index
    %c0_7 = arith.constant 0 : index
    %14 = vector.load %arg11[%c0_4, %c0_5, %c0_6, %c0_7] : memref<1x8x16x128xf32, #tpu.memory_space<vmem>>, vector<1x8x16x128xf32>
    %15 = vector.shape_cast %14 : vector<1x8x16x128xf32> to vector<8x16x128xf32>
    %16 = vector.shape_cast %13 : vector<8x16x128xf32> to vector<1x8x16x128xf32>
    tpu.vector_store %arg11[%c0_4, %c0_5, %c0_6, %c0_7], %16 {strides = array<i32>} : memref<1x8x16x128xf32, #tpu.memory_space<vmem>>, vector<1x8x16x128xf32>,
    return
  }
  func.func @transform_0(%arg0: i32, %arg1: i32, %arg2: i32) -> (i32, i32, i32, i32) {
    %c0_i32 = arith.constant 0 : i32
    %c0_i32_0 = arith.constant 0 : i32
    %c0_i32_1 = arith.constant 0 : i32
    return %arg0, %arg1, %c0_i32, %c0_i32_0 : i32, i32, i32, i32
  }
  func.func @transform_1(%arg0: i32, %arg1: i32, %arg2: i32) -> (i32, i32, i32, i32) {
    %c8_i32 = arith.constant 8 : i32
    %0 = arith.muli %arg1, %c8_i32 : i32
    %c1_i32 = arith.constant 1 : i32
    %1 = arith.subi %0, %c1_i32 : i32
    %c0_i32 = arith.constant 0 : i32
    %2 = arith.maxsi %1, %c0_i32 : i32
    %c0_i32_0 = arith.constant 0 : i32
    %c0_i32_1 = arith.constant 0 : i32
    %c0_i32_2 = arith.constant 0 : i32
    return %arg0, %2, %c0_i32_0, %c0_i32_1 : i32, i32, i32, i32
  }
  func.func @transform_2(%arg0: i32, %arg1: i32, %arg2: i32) -> (i32, i32, i32, i32) {
    %c8_i32 = arith.constant 8 : i32
    %0 = arith.muli %arg1, %c8_i32 : i32
    %c8_i32_0 = arith.constant 8 : i32
    %1 = arith.addi %0, %c8_i32_0 : i32
    %c15_i32 = arith.constant 15 : i32
    %2 = arith.minsi %1, %c15_i32 : i32
    %c0_i32 = arith.constant 0 : i32
    %c0_i32_1 = arith.constant 0 : i32
    %c0_i32_2 = arith.constant 0 : i32
    return %arg0, %2, %c0_i32, %c0_i32_1 : i32, i32, i32, i32
  }
  func.func @transform_3(%arg0: i32, %arg1: i32, %arg2: i32) -> (i32, i32, i32, i32) {
    %c0_i32 = arith.constant 0 : i32
    %c0_i32_0 = arith.constant 0 : i32
    %c0_i32_1 = arith.constant 0 : i32
    return %arg0, %arg1, %c0_i32, %c0_i32_0 : i32, i32, i32, i32
  }
  func.func @transform_4(%arg0: i32, %arg1: i32, %arg2: i32) -> (i32, i32, i32, i32) {
    %c4_i32 = arith.constant 4 : i32
    %0 = arith.muli %arg1, %c4_i32 : i32
    %c1_i32 = arith.constant 1 : i32
    %1 = arith.subi %0, %c1_i32 : i32
    %c0_i32 = arith.constant 0 : i32
    %2 = arith.maxsi %1, %c0_i32 : i32
    %c0_i32_0 = arith.constant 0 : i32
    %c0_i32_1 = arith.constant 0 : i32
    %c0_i32_2 = arith.constant 0 : i32
    return %arg0, %2, %c0_i32_0, %c0_i32_1 : i32, i32, i32, i32
  }
  func.func @transform_5(%arg0: i32, %arg1: i32, %arg2: i32) -> (i32, i32, i32, i32) {
    %c4_i32 = arith.constant 4 : i32
    %0 = arith.muli %arg1, %c4_i32 : i32
    %c4_i32_0 = arith.constant 4 : i32
    %1 = arith.addi %0, %c4_i32_0 : i32
    %c7_i32 = arith.constant 7 : i32
    %2 = arith.minsi %1, %c7_i32 : i32
    %c0_i32 = arith.constant 0 : i32
    %c0_i32_1 = arith.constant 0 : i32
    %c0_i32_2 = arith.constant 0 : i32
    return %arg0, %2, %c0_i32, %c0_i32_1 : i32, i32, i32, i32
  }
  func.func @transform_6(%arg0: i32, %arg1: i32, %arg2: i32) -> (i32, i32) {
    %c0_i32 = arith.constant 0 : i32
    %c0_i32_0 = arith.constant 0 : i32
    %c0_i32_1 = arith.constant 0 : i32
    return %c0_i32, %c0_i32_0 : i32, i32
  }
  func.func @transform_7(%arg0: i32, %arg1: i32, %arg2: i32) -> (i32, i32) {
    %c0_i32 = arith.constant 0 : i32
    %c0_i32_0 = arith.constant 0 : i32
    %c0_i32_1 = arith.constant 0 : i32
    return %c0_i32, %c0_i32_0 : i32, i32
  }
  func.func @transform_8(%arg0: i32, %arg1: i32, %arg2: i32) -> (i32, i32, i32, i32) {
    %c0_i32 = arith.constant 0 : i32
    %c0_i32_0 = arith.constant 0 : i32
    return %arg0, %arg1, %c0_i32, %arg2 : i32, i32, i32, i32
  }
}

</mosaic_0001>

<bundles_post_ra>
// kernel: tpu_custom_call.1
= control target key start
LH: loop header
LB: loop body
LE: loop exit
PB: predicated region body
PF: predicated region fallthrough
CT: control target
= control target key end

     0   :  { %s3495_s0 = inlined_call_operand.vmem [shape: f32[2,16,16,4], index: 0, kind: input, shape index: {}]   ;;  %s3496_s1 = inlined_call_operand.vmem [shape: f32[2,16,16,4], index: 1, kind: input, shape index: {}]   ;;  %s3497_s2 = inlined_call_operand.vmem [shape: f32[2,16,16,4], index: 2, kind: input, shape index: {}]   ;;  %s3498_s3 = inlined_call_operand.vmem [shape: f32[2,8,8,4], index: 3, kind: input, shape index: {}]   ;;  %s3499_s4 = inlined_call_operand.vmem [shape: f32[2,8,8,4], index: 4, kind: input, shape index: {}]   ;;  %s3500_s5 = inlined_call_operand.vmem [shape: f32[2,8,8,4], index: 5, kind: input, shape index: {}]   ;;  %s3501_s6 = inlined_call_operand.vmem [shape: bf16[36,128], index: 6, kind: input, shape index: {}]   ;;  %s3502_s7 = inlined_call_operand.vmem [shape: f32[1,128], index: 7, kind: input, shape index: {}]   ;;  %s3503_s8 = inlined_call_operand.hbm [shape: f32[2,16,16,128], index: 8, kind: output, shape index: {}]  }
   0x1   :  { %3510 = sst [smem:[#allocation11_spill]] %s3495_s0 }
   0x2   :  { %13 = vsyncpa [#allocation5], 0 }
   0x3   :  { %15 = vsyncpa [#allocation5 + $0x1], 0  ;;  %s2750_s27 = smov 0   ;;  %s2752_s28 = smov 0  }
   0x4   :  { %s2754_s29 = smov 0   ;;  %s2756_s30 = smov 0  }
   0x5   :  { %s2758_s9 = smov 0   ;;  %s2760_s10 = smov 0  }
   0x6   :  { %s2762_s11 = smov 0   ;;  %s2764_s12 = smov 0  }
   0x7 LB: > { %3511 = sst [smem:[#allocation7_spill]] %s2682_s10  ;;  %s2382_s13 = sadd.s32 4294967295, %s2690_s12   ;;  %s2690_s12 = sphi %s2764_s12, %s21_s12   ;;  %s2686_s11 = sphi %s2762_s11, %s3529_s11   ;;  %s2682_s10 = sphi %s2760_s10, %s3528_s10   ;;  %s2678_s9 = sphi %s2758_s9, %s3527_s9   ;;  %s2674_s30 = sphi %s2756_s30, %s3526_s30   ;;  %s2670_s29 = sphi %s2754_s29, %s3532_s29   ;;  %s2666_s28 = sphi %s2752_s28, %s3531_s28   ;;  %s2662_s27 = sphi %s2750_s27, %s3530_s27  }
   0x8   : > { %3512 = sst [smem:[#allocation8_spill]] %s2686_s11  ;;  %s2383_s14 = sadd.s32 4294967294, %s2690_s12  }
   0x9   : > { %s36_s15 = sadd.s32 1, %s2682_s10  ;;  %s40_s16 = sadd.s32 1, %s2686_s11 }
   0xa   : > { %p38_p0 = scmp.ge.s32.totalorder %s36_s15, 2  ;;  %p303_p1 = scmp.ne.s32.totalorder %s2670_s29, %s2666_s28 }
   0xb   : > { %p304_p2 = scmp.eq.s32.totalorder %s2382_s13, 3  ;;  %p309_p5 = scmp.ne.s32.totalorder %s2666_s28, %s2662_s27 }
   0xc   : > { %s3534_s15 = smov (%p38_p0, %s36_s15), 0  ;;  %s3536_s16 = smov (!%p38_p0, %s40_s16), %s2686_s11 }
   0xd   : > { %3513 = sst [smem:[#allocation9_spill]] %s3534_s15  ;;  %s287_s17 = ssub.s32 %s2682_s10, %s3534_s15 }
   0xe   : > { %p2801_p3 = por %p304_p2, %p303_p1  ;;  %p42_p4 = scmp.ge.s32.totalorder %s3536_s16, 2 }
   0xf   : > { %p310_p6 = scmp.eq.s32.totalorder %s2383_s14, 3  ;;  %p2398_p7 = scmp.ge.s32.totalorder %s2690_s12, 1 }
  0x10   : > { %s3538_s16 = smov (%p42_p4, %s3536_s16), 0  ;;  %p439_p9 = scmp.lt.s32.totalorder %s2690_s12, 5 }
  0x11   : > { %3515 = sst [smem:[#allocation10_spill]] %s3538_s16  ;;  %p2810_p8 = por %p310_p6, %p309_p5 }
  0x12   : > { %s286_s20 = ssub.s32 %s2686_s11, %s3538_s16  ;;  %s293_s21 = sadd.s32 1, %s2670_s29 }
  0x13   : > { %s288_s22 = sor.u32 %s287_s17, %s286_s20  ;;  %p440_p10 = pnand %p2398_p7, %p439_p9 }
  0x14   : > { %p291_p11 = scmp.eq.s32.totalorder %s288_s22, 0  ;;  %p538_p12 = scmp.lt.s32.totalorder (!%p440_p10), %s2678_s9, 1  ;;  %vm1396_vm0 = vcmask (!%p440_p10), 24576   ;;  %v2692_v0 = vmov (!%p440_p10), 1966171168   ;;  %v662_v2 = vlaneseq (!%p440_p10)  ;;  %v2693_v3 = vmov (!%p440_p10), 0.0  }
  0x15   : > { %443 = sbr.rel (%p440_p10) target bundleno = 553 (0x229), region = 52  ;;  %s2823_s24 = sshll.u32 (!%p440_p10), %s2674_s30, 2  ;;  %v660_v1 = vunpack.c.l.s4 (!%p440_p10), %v2692_v0  ;;  %1408 = vst.msk [vmem:[#allocation2 + $0x29] sm:$0x1] (!%p440_p10), %vm1396_vm0, %v2693_v3  ;;  %1397 = vst.msk [vmem:[#allocation2] sm:$0x1] (!%p440_p10), %vm1396_vm0, %v2693_v3 }
  0x16   : > { %s2819_s23 = scalar_select %p291_p11, %s2670_s29, %s293_s21  }
  0x17   : > { %s2826_s25 = sshll.u32 (!%p440_p10), %s2674_s30, 3  ;;  %1398 = vst.msk [vmem:[#allocation2 + $0x18] sm:$0x1] (!%p440_p10), %vm1396_vm0, %v2693_v3  ;;  %1399 = vst.msk [vmem:[#allocation2 + $0x30] sm:$0x1] (!%p440_p10), %vm1396_vm0, %v2693_v3  ;;  %p585_p13 = scmp.lt.s32.totalorder (!%p440_p10), %s2823_s24, 7  ;;  %v661_v4 = vunpack.c.0.s8 (!%p440_p10), %v660_v1 }
  0x18   : > { %1400 = vst.msk [vmem:[#allocation2 + $0x48] sm:$0x1] (!%p440_p10), %vm1396_vm0, %v2693_v3  ;;  %1401 = vst.msk [vmem:[#allocation2 + $0x60] sm:$0x1] (!%p440_p10), %vm1396_vm0, %v2693_v3  ;;  %p540_p0 = scmp.lt.s32.totalorder (!%p440_p10), %s2826_s25, 15  ;;  %v663_v5 = vshrl.u32 (!%p440_p10), %v662_v2, 7 }
  0x19   : > { %1402 = vst.msk [vmem:[#allocation2 + $0x78] sm:$0x1] (!%p440_p10), %vm1396_vm0, %v2693_v3  ;;  %1403 = vst.msk [vmem:[#allocation2 + $0x90] sm:$0x1] (!%p440_p10), %vm1396_vm0, %v2693_v3  ;;  %v2694_v6 = vmov (!%p440_p10), 1983009808  }
  0x1a   : > { %1404 = vst.msk [vmem:[#allocation2 + $0xa8] sm:$0x1] (!%p440_p10), %vm1396_vm0, %v2693_v3  ;;  %1405 = vst.msk [vmem:[#allocation2 + $0xc0] sm:$0x1] (!%p440_p10), %vm1396_vm0, %v2693_v3  ;;  %v985_v7 = vunpack.c.l.s4 (!%p440_p10), %v2694_v6  ;;  %v2858_v8 = vsub.s32 (!%p440_p10), %v661_v4, %v663_v5  ;;  %s2869_s11 = sadd.s32 (!%p440_p10), 4294967295, %s2823_s24  ;;  %v2875_v17 = vsub.s32 (!%p440_p10), 0, %v663_v5 }
  0x1b   : > { %1406 = vst.msk [vmem:[#allocation2 + $0xd8] sm:$0x1] (!%p440_p10), %vm1396_vm0, %v2693_v3  ;;  %1407 = vst.msk [vmem:[#allocation2 + $0x11] sm:$0x1] (!%p440_p10), %vm1396_vm0, %v2693_v3  ;;  %p594_p1 = scmp.gt.s32.totalorder (!%p440_p10), %s2869_s11, 0  ;;  %p2426_p2 = scmp.lt.s32.totalorder (!%p440_p10), %s2869_s11, 7 }
  0x1c   : > { %1409 = vst.msk [vmem:[#allocation2 + $0x41] sm:$0x1] %vm1396_vm0, %v2693_v3  ;;  %1410 = vst.msk [vmem:[#allocation2 + $0x59] sm:$0x1] %vm1396_vm0, %v2693_v3  ;;  %s539_s26 = scalar_select %p538_p12, %s2678_s9, 1  ;;  %v986_v9 = vunpack.c.0.s8 %v985_v7  ;;  %vm1417_vm1 = vcmask 31744  }
  0x1d   : > { %1411 = vst.msk [vmem:[#allocation2 + $0x71] sm:$0x1] %vm1396_vm0, %v2693_v3  ;;  %1412 = vst.msk [vmem:[#allocation2 + $0x89] sm:$0x1] %vm1396_vm0, %v2693_v3  ;;  %s586_s14 = scalar_select %p585_p13, %s2823_s24, 7  ;;  %vm2059_vm4 = vcmask 1041408  }
  0x1e   : > { %1413 = vst.msk [vmem:[#allocation2 + $0xa1] sm:$0x1] %vm1396_vm0, %v2693_v3  ;;  %1414 = vst.msk [vmem:[#allocation2 + $0xb9] sm:$0x1] %vm1396_vm0, %v2693_v3  ;;  %s2853_s13 = sshll.u32 %s539_s26, 3  ;;  %v2877_v18 = vsub.s32 %v986_v9, %v663_v5  ;;  %s3517_s0 = sld [smem:[#allocation11_spill]] }
  0x1f   : > { %1415 = vst.msk [vmem:[#allocation2 + $0xd1] sm:$0x1] %vm1396_vm0, %v2693_v3  ;;  %1416 = vst.msk [vmem:[#allocation2 + $0xe9] sm:$0x1] %vm1396_vm0, %v2693_v3  ;;  %s541_s17 = scalar_select %p540_p0, %s2826_s25, 15  ;;  %vm1528_vm5 = vcmask 64544  }
  0x20   : > { %s588_s20 = sadd.s32 %s2853_s13, %s586_s14  ;;  %s2871_s14 = sshll.u32 %s539_s26, 5  ;;  %vm1593_vm6 = vcmask 97344   ;;  %vm1658_vm7 = vcmask 130144   ;;  %vm1723_vm8 = vcmask 162944   ;;  %vm1788_vm9 = vcmask 195744  }
  0x21   : > { %s2423_s21 = sshll.u32 %s588_s20, 3  ;;  %s2401_s10 = sshll.u32 %s541_s17, 1  ;;  %vm1854_vm10 = vcmask 228544   ;;  %vm1919_vm11 = vcmask 261344   ;;  %vm1984_vm12 = vcmask 294144   ;;  %vm2034_vm13 = vcmask 293888  }
  0x22   : > { %s2863_s15 = scalar_lea.vmem %s3498_s3, %s2423_s21  ;;  %s2887_s16 = sadd.s32 %s2871_s14, %s2401_s10 }
  0x23   : > { %v651_v10 = vld [vmem:[%s2863_s15 + $0x8] sm:$0xff]  ;;  %v650_v11 = vld [vmem:[%s2863_s15] sm:$0xff]  ;;  %v652_v12 = vld [vmem:[%s2863_s15 + $0x10] sm:$0xff]  ;;  %s595_s10 = scalar_select %p594_p1, %s2869_s11, 0 }
  0x24   : > { %v707_v13 = vcombine.high %v651_v10, %v651_v10  ;;  %v714_v14 = vrot.slane %v651_v10, %v2858_v8  ;;  %v658_v15 = vcombine.high %v650_v11, %v650_v11  ;;  %v665_v16 = vrot.slane %v650_v11, %v2858_v8  ;;  %s2403_s26 = sshll.u32 %s2887_s16, 3  ;;  %s2918_s17 = sadd.s32 4294967295, %s2826_s25 }
  0x25   : > { %v756_v19 = vcombine.high %v652_v12, %v652_v12  ;;  %v2880_v20 = vrot.slane %v652_v12, %v2858_v8  ;;  %s3540_s10 = smov (!%p2426_p2, %s595_s10), 7  ;;  %s2923_s22 = scalar_lea.vmem %s3517_s0, %s2403_s26 }
  0x26   : > { %v721_v21 = vrot.slane %v707_v13, %v2858_v8  ;;  %v722_v22 = vcombine.high %v714_v14, %v714_v14  ;;  %v730_v23 = vrot.slane %v714_v14, %v2858_v8  ;;  %v672_v24 = vrot.slane %v658_v15, %v2858_v8  ;;  %s601_s11 = sadd.s32 %s3540_s10, %s2853_s13  ;;  %p550_p4 = scmp.gt.s32.totalorder %s2918_s17, 0  ;;  %v636_v1 = vld [vmem:[%s2923_s22 + $0x30] sm:$0xff]  ;;  %v637_v11 = vld [vmem:[%s2923_s22 + $0x38] sm:$0xff] }
  0x27   : > { %v673_v25 = vcombine.high %v665_v16, %v665_v16  ;;  %v681_v26 = vrot.slane %v665_v16, %v2858_v8  ;;  %v2891_v27 = vrot.slane %v756_v19, %v2858_v8  ;;  %v771_v28 = vcombine.high %v2880_v20, %v2880_v20  ;;  %s2946_s16 = sshll.u32 %s601_s11, 3  ;;  %p2406_p5 = scmp.lt.s32.totalorder %s2918_s17, 15 }
  0x28   : > { %v723_v29 = vcombine.high %v721_v21, %v721_v21  ;;  %v737_v30 = vrot.slane %v721_v21, %v2858_v8  ;;  %v744_v31 = vrot.slane %v722_v22, %v2858_v8  ;;  %v752_v32 = vcombine.high %v730_v23, %v730_v23  ;;  %s2961_s10 = scalar_select %p550_p4, %s2918_s17, 0 }
  0x29   : > { %v889_v33 = vrot.slane %v730_v23, %v2875_v17  ;;  %v674_v34 = vcombine.high %v672_v24, %v672_v24  ;;  %v688_v35 = vrot.slane %v672_v24, %v2858_v8  ;;  %v695_v36 = vrot.slane %v673_v25, %v2858_v8  ;;  %v630_v23 = vld [vmem:[%s2923_s22] sm:$0xff]  ;;  %s603_s21 = scalar_lea.vmem %s3499_s4, %s2946_s16  ;;  %s609_s11 = sadd.s32 4, %s2823_s24 }
  0x2a   : > { %v751_v37 = vrot.slane %v723_v29, %v2858_v8  ;;  %v753_v38 = vcombine.high %v737_v30, %v737_v30  ;;  %v754_v39 = vcombine.high %v744_v31, %v744_v31  ;;  %v893_v40 = vrot.slane %v744_v31, %v2875_v17  ;;  %s3542_s10 = smov (!%p2406_p5, %s2961_s10), 15  ;;  %p3000_p6 = scmp.lt.s32.totalorder %s609_s11, 7 }
  0x2b   : > { %v897_v41 = vrot.slane %v752_v32, %v2875_v17  ;;  %v905_v42 = vrot.slane %v737_v30, %v2875_v17  ;;  %v702_v43 = vrot.slane %v674_v34, %v2858_v8  ;;  %v703_v44 = vcombine.high %v681_v26, %v681_v26  ;;  %v631_v30 = vld [vmem:[%s2923_s22 + $0x8] sm:$0xff]  ;;  %p1384_p7 = scmp.eq.s32.totalorder %s2674_s30, 0  ;;  %p1390_p10 = scmp.eq.s32.totalorder %s2674_s30, 1 }
  0x2c   : > { %v755_v45 = vcombine.high %v751_v37, %v751_v37  ;;  %v901_v46 = vrot.slane %v754_v39, %v2875_v17  ;;  %v909_v47 = vrot.slane %v751_v37, %v2875_v17  ;;  %v913_v48 = vrot.slane %v753_v38, %v2875_v17  ;;  %v633_v37 = vld [vmem:[%s2923_s22 + $0x18] sm:$0xff]  ;;  %s3544_s11 = smov (!%p3000_p6, %s609_s11), 7  ;;  %s2700_s26 = smov 24  }
  0x2d   : > { %v1016_v49 = vcombine.low %v889_v33, %v893_v40  ;;  %v704_v50 = vcombine.high %v688_v35, %v688_v35  ;;  %v705_v51 = vcombine.high %v695_v36, %v695_v36  ;;  %v706_v52 = vcombine.high %v702_v43, %v702_v43  ;;  %s3050_s24 = scalar_select %p1384_p7, 1, 0 }
  0x2e   : > { %v917_v53 = vrot.slane %v755_v45, %v2875_v17  ;;  %v1017_v54 = vcombine.low %v897_v41, %v901_v46  ;;  %v1033_v55 = vcombine.low %v905_v42, %v909_v47  ;;  %v857_v56 = vrot.slane %v681_v26, %v2875_v17  ;;  %v1142_v42 = vld [vmem:[%s603_s21] sm:$0xff] }
  0x2f   : > { %v1024_v57 = vrot.slane %v1016_v49, %v2877_v18  ;;  %v861_v58 = vrot.slane %v695_v36, %v2875_v17  ;;  %v865_v59 = vrot.slane %v703_v44, %v2875_v17  ;;  %v869_v60 = vrot.slane %v705_v51, %v2875_v17  ;;  %v632_v36 = vld [vmem:[%s2923_s22 + $0x10] sm:$0xff]  ;;  %v634_v47 = vld [vmem:[%s2923_s22 + $0x20] sm:$0xff] }
  0x30   : > { %v1031_v61 = vrot.slane %v1017_v54, %v2877_v18  ;;  %v1034_v62 = vcombine.low %v913_v48, %v917_v53  ;;  %v1041_v63 = vrot.slane %v1033_v55, %v2877_v18  ;;  %v873_v0 = vrot.slane %v688_v35, %v2875_v17 }
  0x31   : > { %v877_v2 = vrot.slane %v702_v43, %v2875_v17  ;;  %v881_v3 = vrot.slane %v704_v50, %v2875_v17  ;;  %v885_v4 = vrot.slane %v706_v52, %v2875_v17  ;;  %v982_v5 = vcombine.low %v857_v56, %v861_v58  ;;  %v635_v56 = vld [vmem:[%s2923_s22 + $0x28] sm:$0xff] }
  0x32   : > { %v2941_v6 = vcombine.low %v1024_v57, %v1031_v61  ;;  %v1048_v7 = vrot.slane %v1034_v62, %v2877_v18  ;;  %v983_v9 = vcombine.low %v865_v59, %v869_v60  ;;  %v772_v10 = vcombine.high %v2891_v27, %v2891_v27  ;;  %v3008_v57 = vld [vmem:[%s2863_s15 + $0x18] sm:$0xff]  ;;  %s2411_s15 = sshll.u32 %s3542_s10, 1  ;;  %s3508_s10 = smov 4  }
  0x33   : > { %v990_v12 = vrot.slane %v982_v5, %v2877_v18  ;;  %v999_v13 = vcombine.low %v873_v0, %v877_v2  ;;  %v1000_v14 = vcombine.low %v881_v3, %v885_v4  ;;  %v779_v15 = vrot.slane %v2880_v20, %v2858_v8  ;;  %v638_v2 = vld [vmem:[%s2923_s22 + $0x40] sm:$0xff]  ;;  %v640_v4 = vld [vmem:[%s2923_s22 + $0x50] sm:$0xff]  ;;  %s3040_s17 = sadd.s32 %s2411_s15, %s2871_s14  ;;  %s2696_s15 = smov 8  }
  0x34   : > { %v2952_v16 = vcombine.low %v1041_v63, %v1048_v7  ;;  %v1132_v19 = vadd.f32 %v2941_v6, %v636_v1  ;;  %v997_v21 = vrot.slane %v983_v9, %v2877_v18  ;;  %v786_v22 = vrot.slane %v2891_v27, %v2858_v8  ;;  %s2413_s20 = sshll.u32 %s3040_s17, 3 }
  0x35   : > { %v1007_v24 = vrot.slane %v999_v13, %v2877_v18  ;;  %v1014_v25 = vrot.slane %v1000_v14, %v2877_v18  ;;  %v793_v26 = vrot.slane %v771_v28, %v2858_v8  ;;  %v800_v29 = vrot.slane %v772_v10, %v2858_v8  ;;  %v639_v10 = vld [vmem:[%s2923_s22 + $0x48] sm:$0xff]  ;;  %s560_s0 = scalar_lea.vmem %s3496_s1, %s2413_s20 }
  0x36   : > { %v1133_v27 = vadd.f32 %v2952_v16, %v637_v11  ;;  %1430 = vst.msk [vmem:[#allocation2 + $0x61] sm:$0xff] %vm1417_vm1, %v1132_v19  ;;  %v998_v31 = vcombine.low %v990_v12, %v997_v21  ;;  %v801_v32 = vcombine.high %v779_v15, %v779_v15  ;;  %v802_v33 = vcombine.high %v786_v22, %v786_v22  ;;  %v641_v12 = vld [vmem:[%s2923_s22 + $0x58] sm:$0xff] }
  0x37   : > { %v1015_v34 = vcombine.low %v1007_v24, %v1014_v25  ;;  %v803_v20 = vcombine.high %v793_v26, %v793_v26  ;;  %v804_v28 = vcombine.high %v800_v29, %v800_v29  ;;  %v921_v35 = vrot.slane %v779_v15, %v2875_v17 }
  0x38   : > { %1431 = vst.msk [vmem:[#allocation2 + $0x69] sm:$0xff] %vm1417_vm1, %v1133_v27  ;;  %v1126_v38 = vadd.f32 %v998_v31, %v630_v23  ;;  %v925_v39 = vrot.slane %v793_v26, %v2875_v17  ;;  %v929_v40 = vrot.slane %v801_v32, %v2875_v17  ;;  %v937_v41 = vrot.slane %v786_v22, %v2875_v17 }
  0x39   : > { %v1127_v43 = vadd.f32 %v1015_v34, %v631_v30  ;;  %v933_v44 = vrot.slane %v803_v20, %v2875_v17  ;;  %v941_v45 = vrot.slane %v800_v29, %v2875_v17  ;;  %v945_v46 = vrot.slane %v802_v33, %v2875_v17 }
  0x3a   : > { %1424 = vst.msk [vmem:[#allocation2 + $0x19] sm:$0xff] %vm1417_vm1, %v1126_v38  ;;  %v949_v48 = vrot.slane %v804_v28, %v2875_v17  ;;  %v1050_v49 = vcombine.low %v921_v35, %v925_v39  ;;  %v1128_v50 = vadd.f32 %v998_v31, %v632_v36  ;;  %v1129_v51 = vadd.f32 %v1015_v34, %v633_v37 }
  0x3b   : > { %1425 = vst.msk [vmem:[#allocation2 + $0x21] sm:$0xff] %vm1417_vm1, %v1127_v43  ;;  %v1051_v52 = vcombine.low %v929_v40, %v933_v44  ;;  %v1067_v53 = vcombine.low %v937_v41, %v941_v45  ;;  %v1144_v54 = vcombine.high %v1142_v42, %v1142_v42  ;;  %v1151_v55 = vrot.slane %v1142_v42, %v2858_v8 }
  0x3c   : > { %v1058_v58 = vrot.slane %v1050_v49, %v2877_v18  ;;  %v1068_v59 = vcombine.low %v945_v46, %v949_v48  ;;  %1426 = vst.msk [vmem:[#allocation2 + $0x31] sm:$0xff] %vm1417_vm1, %v1128_v50  ;;  %1427 = vst.msk [vmem:[#allocation2 + $0x39] sm:$0xff] %vm1417_vm1, %v1129_v51  ;;  %v1130_v60 = vadd.f32 %v2941_v6, %v634_v47 }
  0x3d   : > { %v1480_v61 = vld [vmem:[#allocation2 + $0x61] sm:$0xff]  ;;  %v1065_v62 = vrot.slane %v1051_v52, %v2877_v18  ;;  %v1075_v63 = vrot.slane %v1067_v53, %v2877_v18  ;;  %v1158_v0 = vrot.slane %v1144_v54, %v2858_v8  ;;  %v1159_v1 = vcombine.high %v1151_v55, %v1151_v55 }
  0x3e   : > { %v1082_v3 = vrot.slane %v1068_v59, %v2877_v18  ;;  %v1167_v5 = vrot.slane %v1151_v55, %v2858_v8  ;;  %v1131_v6 = vadd.f32 %v2952_v16, %v635_v56  ;;  %1428 = vst.msk [vmem:[#allocation2 + $0x49] sm:$0xff] %vm1417_vm1, %v1130_v60  ;;  %v805_v7 = vcombine.high %v3008_v57, %v3008_v57 }
  0x3f   : > { %v1481_v9 = vld [vmem:[#allocation2 + $0x69] sm:$0xff]  ;;  %v1066_v11 = vcombine.low %v1058_v58, %v1065_v62  ;;  %v1160_v13 = vcombine.high %v1158_v0, %v1158_v0  ;;  %v1174_v14 = vrot.slane %v1158_v0, %v2858_v8  ;;  %v1181_v15 = vrot.slane %v1159_v1, %v2858_v8 }
  0x40   : > { %v3037_v16 = vpack.c.bf16 %v1481_v9, %v1480_v61  ;;  %v1083_v19 = vcombine.low %v1075_v63, %v1082_v3  ;;  %v1189_v21 = vcombine.high %v1167_v5, %v1167_v5  ;;  %1429 = vst.msk [vmem:[#allocation2 + $0x51] sm:$0xff] %vm1417_vm1, %v1131_v6  ;;  %v3045_v22 = vrot.slane %v3008_v57, %v2858_v8  ;;  %v646_v57 = vld [vmem:[%s560_s0] sm:$0xff]  ;;  %v647_v0 = vld [vmem:[%s560_s0 + $0x8] sm:$0xff] }
  0x41   : > { %v1474_v23 = vld [vmem:[#allocation2 + $0x19] sm:$0xff]  ;;  %v1134_v24 = vadd.f32 %v1066_v11, %v638_v2  ;;  %v1136_v26 = vadd.f32 %v1066_v11, %v640_v4  ;;  %v1188_v29 = vrot.slane %v1160_v13, %v2858_v8  ;;  %v1190_v27 = vcombine.high %v1174_v14, %v1174_v14 }
  0x42   : > { %v1602_v25 = vld [vmem:[#allocation2 + $0x18] sm:$0xff]  ;;  %1512 = vrot.lane.b32.xlu0 %v3037_v16, %s3508_s10  ;;  %v1475_v30 = vld [vmem:[#allocation2 + $0x21] sm:$0xff]  ;;  %v1135_v33 = vadd.f32 %v1083_v19, %v639_v10  ;;  %v1137_v34 = vadd.f32 %v1083_v19, %v641_v12  ;;  %v1191_v20 = vcombine.high %v1181_v15, %v1181_v15  ;;  %v1196_v28 = vrot.slane %v1167_v5, %v2875_v17 }
  0x43   : > { %v1539_v31 = vld [vmem:[#allocation2 + $0x1a] sm:$0xff]  ;;  %v1540_v32 = vld [vmem:[#allocation2 + $0x22] sm:$0xff]  ;;  %v3058_v35 = vpack.c.bf16 %v1475_v30, %v1474_v23  ;;  %1432 = vst.msk [vmem:[#allocation2 + $0x79] sm:$0xff] %vm1417_vm1, %v1134_v24  ;;  %v1604_v38 = vld [vmem:[#allocation2 + $0x30] sm:$0xff]  ;;  %v1192_v40 = vcombine.high %v1188_v29, %v1188_v29  ;;  %v1200_v41 = vrot.slane %v1181_v15, %v2875_v17  ;;  %v1204_v44 = vrot.slane %v1189_v21, %v2875_v17 }
  0x44   : > { %v3060_v36 = vpack.c.bf16 %v1540_v32, %v1539_v31  ;;  %v1603_v37 = vld [vmem:[#allocation2 + $0x20] sm:$0xff]  ;;  %v1605_v39 = vld [vmem:[#allocation2 + $0x38] sm:$0xff]  ;;  %1434 = vst.msk [vmem:[#allocation2 + $0x91] sm:$0xff] %vm1417_vm1, %v1136_v26  ;;  %1433 = vst.msk [vmem:[#allocation2 + $0x81] sm:$0xff] %vm1417_vm1, %v1135_v33  ;;  %v1208_v45 = vrot.slane %v1191_v20, %v2875_v17  ;;  %v1212_v46 = vrot.slane %v1174_v14, %v2875_v17  ;;  %v1386_v53 = vstv %s3050_s24  ;;  %s2697_s24 = smov 12  }
  0x45   : > { %v1618_v42 = vpack.c.bf16 %v1603_v37, %v1602_v25  ;;  %v3067_v43 = vpack.c.bf16 %v1605_v39, %v1604_v38  ;;  %1435 = vst.msk [vmem:[#allocation2 + $0x99] sm:$0xff] %vm1417_vm1, %v1137_v34  ;;  %1506 = vrot.lane.b32.xlu1 %v3058_v35, %s3508_s10  ;;  %v1216_v47 = vrot.slane %v1188_v29, %v2875_v17  ;;  %v1800_v49 = vld [vmem:[#allocation2 + $0x48] sm:$0xff]  ;;  %s3519_s10 = scalar_select %p3000_p6, %s3544_s11, 7  ;;  %vm3121_vm2 = vcmp.eq.s32.totalorder %v1386_v53, 1  ;;  %v1669_v32 = vld [vmem:[#allocation2 + $0x31] sm:$0xff]  ;;  %v1670_v33 = vld [vmem:[#allocation2 + $0x39] sm:$0xff] }
  0x46   : > { %v1220_v48 = vrot.slane %v1190_v27, %v2875_v17  ;;  %1571 = vrot.lane.b32.xlu0 %v3060_v36, %s2696_s15  ;;  %v1224_v50 = vrot.slane %v1192_v40, %v2875_v17  ;;  %v1225_v51 = vcombine.low %v1196_v28, %v1200_v41  ;;  %v1226_v52 = vcombine.low %v1204_v44, %v1208_v45  ;;  %v1545_v14 = vld [vmem:[#allocation2 + $0x62] sm:$0xff]  ;;  %v1546_v15 = vld [vmem:[#allocation2 + $0x6a] sm:$0xff]  ;;  %v1735_v11 = vld [vmem:[#allocation2 + $0x3a] sm:$0xff]  ;;  %s3227_s11 = scalar_select %p1390_p10, 1, 0 }
  0x47   : > { %s3090_s21 = sadd.s32 %s2853_s13, %s3519_s10  ;;  %1465 = vst.msk [vmem:[#allocation3 + $0x8] sm:$0xff] %vm1417_vm1, %v1618_v42  ;;  %1466 = vst.msk [vmem:[#allocation3 + $0x10] sm:$0xff] %vm1417_vm1, %v3067_v43  ;;  %v1242_v54 = vcombine.low %v1212_v46, %v1216_v47  ;;  %v1801_v55 = vld [vmem:[#allocation2 + $0x50] sm:$0xff]  ;;  %v819_v56 = vrot.slane %v805_v7, %v2858_v8  ;;  %v820_v58 = vcombine.high %v3045_v22, %v3045_v22  ;;  %s3520_s13 = sadd.s32 8, %s2826_s25  ;;  %v1608_v37 = vld [vmem:[#allocation2 + $0x60] sm:$0xff] }
  0x48   : > { %v3103_v59 = vrot.slane %v3045_v22, %v2858_v8  ;;  %p3107_p9 = scmp.lt.s32.totalorder %s3520_s13, 15  ;;  %v1233_v60 = vrot.slane %v1225_v51, %v2877_v18  ;;  %v1240_v61 = vrot.slane %v1226_v52, %v2877_v18  ;;  %v1243_v62 = vcombine.low %v1220_v48, %v1224_v50  ;;  %s2438_s16 = sshll.u32 %s3090_s21, 3  ;;  %v1609_v44 = vld [vmem:[#allocation2 + $0x68] sm:$0xff] }
  0x49   : > { %v3113_v63 = vpack.c.bf16 %v1801_v55, %v1800_v49  ;;  %v1250_v1 = vrot.slane %v1242_v54, %v2877_v18  ;;  %v821_v2 = vcombine.high %v819_v56, %v819_v56  ;;  %v835_v3 = vrot.slane %v819_v56, %v2858_v8  ;;  %s3524_s0 = smov %s3520_s13  ;;  %s619_s20 = scalar_lea.vmem %s3500_s5, %s2438_s16 }
  0x4a   : > { %v842_v4 = vrot.slane %v820_v58, %v2858_v8  ;;  %v1482_v5 = vld [vmem:[#allocation2 + $0x79] sm:$0xff]  ;;  %1634 = vrot.lane.b32.xlu0 %v1618_v42, %s2697_s24  ;;  %v1241_v9 = vcombine.low %v1233_v60, %v1240_v61  ;;  %v1257_v10 = vrot.slane %v1243_v62, %v2877_v18  ;;  %v850_v12 = vcombine.high %v3103_v59, %v3103_v59  ;;  %s3546_s0 = smov (!%p3107_p9, %s3524_s0), 15  ;;  %s3525_s25 = smov 4  }
  0x4b   : > { %v1610_v6 = vld [vmem:[#allocation2 + $0x78] sm:$0xff]  ;;  %v1612_v7 = vld [vmem:[#allocation2 + $0x90] sm:$0xff]  ;;  %1467 = vst.msk [vmem:[#allocation3 + $0x18] sm:$0xff] %vm1417_vm1, %v3113_v63  ;;  %v1483_v13 = vld [vmem:[#allocation2 + $0x81] sm:$0xff]  ;;  %v849_v19 = vrot.slane %v821_v2, %v2858_v8  ;;  %v851_v21 = vcombine.high %v835_v3, %v835_v3  ;;  %v953_v23 = vrot.slane %v3103_v59, %v2875_v17  ;;  %v3151_v38 = vpack.c.bf16 %v1546_v15, %v1545_v14  ;;  %s3548_s0 = smov (!%p3107_p9, %s3546_s0), 15  ;;  %s2698_s21 = smov 16  }
  0x4c   : > { %v852_v22 = vcombine.high %v842_v4, %v842_v4  ;;  %v3138_v24 = vpack.c.bf16 %v1483_v13, %v1482_v5  ;;  %v1611_v25 = vld [vmem:[#allocation2 + $0x80] sm:$0xff]  ;;  %v1613_v26 = vld [vmem:[#allocation2 + $0x98] sm:$0xff]  ;;  %v1258_v29 = vcombine.low %v1250_v1, %v1257_v10  ;;  %v1261_v27 = vadd.f32 %v1241_v9, %v646_v57  ;;  %s3192_s17 = sshll.u32 %s3548_s0, 1 }
  0x4d   : > { %v957_v30 = vrot.slane %v842_v4, %v2875_v17  ;;  %v3144_v31 = vpack.c.bf16 %v1611_v25, %v1610_v6  ;;  %v3146_v34 = vpack.c.bf16 %v1613_v26, %v1612_v7  ;;  %v853_v20 = vcombine.high %v849_v19, %v849_v19  ;;  %v1547_v39 = vld [vmem:[#allocation2 + $0x7a] sm:$0xff]  ;;  %v1548_v40 = vld [vmem:[#allocation2 + $0x82] sm:$0xff]  ;;  %v1734_v10 = vld [vmem:[#allocation2 + $0x32] sm:$0xff]  ;;  %s575_s13 = sadd.s32 %s3192_s17, %s2871_s14  ;;  %s2699_s14 = smov 20  }
  0x4e   : > { %v961_v28 = vrot.slane %v850_v12, %v2875_v17  ;;  %1514 = vrot.lane.b32.xlu1 %v3138_v24, %s3525_s25  ;;  %1636 = vrot.lane.b32.xlu0 %v3067_v43, %s2697_s24  ;;  %v1262_v41 = vadd.f32 %v1258_v29, %v647_v0  ;;  %v1388_v42 = vsel %vm3121_vm2, 0.0, %v1261_v27  ;;  %v965_v45 = vrot.slane %v852_v22, %v2875_v17  ;;  %v1263_v49 = vld [vmem:[%s619_s20] sm:$0xff]  ;;  %v643_v4 = vld [vmem:[%s2923_s22 + $0x68] sm:$0xff]  ;;  %s2701_s20 = smov 28   ;;  %s2454_s17 = sshll.u32 %s2678_s9, 5 }
  0x4f   : > { %1418 = vst.msk [vmem:[#allocation2 + $0x1] sm:$0xff] %vm1417_vm1, %v1388_v42  ;;  %v969_v46 = vrot.slane %v835_v3, %v2875_v17  ;;  %v973_v47 = vrot.slane %v849_v19, %v2875_v17  ;;  %v977_v48 = vrot.slane %v851_v21, %v2875_v17  ;;  %1469 = vst.msk [vmem:[#allocation3 + $0x28] sm:$0xff] %vm1417_vm1, %v3144_v31  ;;  %v642_v1 = vld [vmem:[%s2923_s22 + $0x60] sm:$0xff]  ;;  %v644_v3 = vld [vmem:[%s2923_s22 + $0x70] sm:$0xff] }
  0x50   : > { %1470 = vst.msk [vmem:[#allocation3 + $0x30] sm:$0xff] %vm1417_vm1, %v3146_v34  ;;  %v3166_v50 = vpack.c.bf16 %v1670_v33, %v1669_v32  ;;  %v1389_v51 = vsel %vm3121_vm2, 0.0, %v1262_v41  ;;  %v981_v52 = vrot.slane %v853_v20, %v2875_v17  ;;  %v1084_v53 = vcombine.low %v953_v23, %v957_v30  ;;  %v645_v6 = vld [vmem:[%s2923_s22 + $0x78] sm:$0xff]  ;;  %s2420_s22 = sshll.u32 %s575_s13, 3 }
  0x51   : > { %v3174_v54 = vpack.c.bf16 %v1548_v40, %v1547_v39  ;;  %1419 = vst.msk [vmem:[#allocation2 + $0x9] sm:$0xff] %vm1417_vm1, %v1389_v51  ;;  %v1085_v55 = vcombine.low %v961_v28, %v965_v45  ;;  %v1101_v56 = vcombine.low %v969_v46, %v973_v47  ;;  %v3177_v58 = vpack.c.bf16 %v1609_v44, %v1608_v37  ;;  %s577_s10 = scalar_lea.vmem %s3497_s2, %s2420_s22  ;;  %v1677_v47 = vld [vmem:[#allocation2 + $0x91] sm:$0xff]  ;;  %s2702_s22 = smov 32  }
  0x52   : > { %1577 = vrot.lane.b32.xlu1 %v3151_v38, %s2696_s15  ;;  %1699 = vrot.lane.b32.xlu0 %v3058_v35, %s2698_s21  ;;  %v1092_v59 = vrot.slane %v1084_v53, %v2877_v18  ;;  %v1102_v60 = vcombine.low %v977_v48, %v981_v52  ;;  %v1265_v61 = vcombine.high %v1263_v49, %v1263_v49  ;;  %v1678_v48 = vld [vmem:[#allocation2 + $0x99] sm:$0xff] }
  0x53   : > { %v1099_v62 = vrot.slane %v1085_v55, %v2877_v18  ;;  %v1109_v57 = vrot.slane %v1101_v56, %v2877_v18  ;;  %v1272_v0 = vrot.slane %v1263_v49, %v2858_v8  ;;  %1468 = vst.msk [vmem:[#allocation3 + $0x20] sm:$0xff] %vm1417_vm1, %v3177_v58  ;;  %v3208_v27 = vpack.c.bf16 %v1735_v11, %v1734_v10  ;;  %v1742_v11 = vld [vmem:[#allocation2 + $0x92] sm:$0xff] }
  0x54   : > { %v1116_v2 = vrot.slane %v1102_v60, %v2877_v18  ;;  %v1279_v35 = vrot.slane %v1265_v61, %v2858_v8  ;;  %v648_v61 = vld [vmem:[%s577_s10] sm:$0xff] }
  0x55   : > { %v1100_v5 = vcombine.low %v1092_v59, %v1099_v62  ;;  %v1280_v7 = vcombine.high %v1272_v0, %v1272_v0  ;;  %v1288_v9 = vrot.slane %v1272_v0, %v2858_v8  ;;  %v1392_v59 = vstv %s3227_s11 }
  0x56   : > { %1579 = vrot.lane.b32.xlu1 %v3174_v54, %s2696_s15  ;;  %1701 = vrot.lane.b32.xlu0 %v3166_v50, %s2698_s21  ;;  %v1117_v12 = vcombine.low %v1109_v57, %v1116_v2  ;;  %v1281_v13 = vcombine.high %v1279_v35, %v1279_v35  ;;  %v1295_v14 = vrot.slane %v1279_v35, %v2858_v8  ;;  %v1440_v45 = vld [vmem:[#allocation2] sm:$0xff]  ;;  %vm1393_vm3 = vcmp.eq.s32.totalorder %v1392_v59, 1 }
  0x57   : > { %v1138_v15 = vadd.f32 %v1100_v5, %v642_v1  ;;  %v1140_v19 = vadd.f32 %v1100_v5, %v644_v3  ;;  %v1302_v21 = vrot.slane %v1280_v7, %v2858_v8  ;;  %v1310_v22 = vcombine.high %v1288_v9, %v1288_v9  ;;  %v1472_v52 = vld [vmem:[#allocation2 + $0x1] sm:$0xff] }
  0x58   : > { %v1139_v23 = vadd.f32 %v1117_v12, %v643_v4  ;;  %v1141_v25 = vadd.f32 %v1117_v12, %v645_v6  ;;  %v1309_v26 = vrot.slane %v1281_v13, %v2858_v8  ;;  %v1311_v29 = vcombine.high %v1295_v14, %v1295_v14  ;;  %v1441_v46 = vld [vmem:[#allocation2 + $0x8] sm:$0xff]  ;;  %v1743_v12 = vld [vmem:[#allocation2 + $0x9a] sm:$0xff] }
  0x59   : > { %1436 = vst.msk [vmem:[#allocation2 + $0xa9] sm:$0xff] %vm1417_vm1, %v1138_v15  ;;  %1438 = vst.msk [vmem:[#allocation2 + $0xc1] sm:$0xff] %vm1417_vm1, %v1140_v19  ;;  %v1312_v30 = vcombine.high %v1302_v21, %v1302_v21  ;;  %v1317_v32 = vrot.slane %v1288_v9, %v2875_v17  ;;  %v1321_v33 = vrot.slane %v1302_v21, %v2875_v17  ;;  %v1473_v53 = vld [vmem:[#allocation2 + $0x9] sm:$0xff]  ;;  %v1866_v15 = vld [vmem:[#allocation2 + $0x51] sm:$0xff] }
  0x5a   : > { %1642 = vrot.lane.b32.xlu1 %v3144_v31, %s2697_s24  ;;  %1764 = vrot.lane.b32.xlu0 %v3060_v36, %s2699_s14  ;;  %1437 = vst.msk [vmem:[#allocation2 + $0xb1] sm:$0xff] %vm1417_vm1, %v1139_v23  ;;  %1439 = vst.msk [vmem:[#allocation2 + $0xc9] sm:$0xff] %vm1417_vm1, %v1141_v25  ;;  %v1313_v8 = vcombine.high %v1309_v26, %v1309_v26  ;;  %v1325_v20 = vrot.slane %v1310_v22, %v2875_v17  ;;  %v649_v1 = vld [vmem:[%s577_s10 + $0x8] sm:$0xff]  ;;  %v2593_v23 = vld [vmem:[%s3501_s6] sm:$0xff]  }
  0x5b   : > { %v1329_v28 = vrot.slane %v1312_v30, %v2875_v17  ;;  %v1333_v37 = vrot.slane %v1295_v14, %v2875_v17  ;;  %v1337_v39 = vrot.slane %v1309_v26, %v2875_v17  ;;  %v1341_v40 = vrot.slane %v1311_v29, %v2875_v17  ;;  %v1538_v5 = vld [vmem:[#allocation2 + $0xa] sm:$0xff]  ;;  %2474 = vmatprep.subr.bf16.mxu0 %v2593_v23  ;;  %v1931_v26 = vld [vmem:[#allocation2 + $0x52] sm:$0xff] }
  0x5c   : > { %v1345_v36 = vrot.slane %v1313_v8, %v2875_v17  ;;  %v1346_v41 = vcombine.low %v1317_v32, %v1321_v33  ;;  %v1456_v51 = vpack.c.bf16 %v1441_v46, %v1440_v45  ;;  %v3243_v57 = vpack.c.bf16 %v1678_v48, %v1677_v47  ;;  %v1865_v14 = vld [vmem:[#allocation2 + $0x49] sm:$0xff]  ;;  %2496 = vmatprep.subr.bf16.mxu1 %v2593_v23 }
  0x5d   : > { %v1347_v42 = vcombine.low %v1325_v20, %v1329_v28  ;;  %v1363_v44 = vcombine.low %v1333_v37, %v1337_v39  ;;  %v1488_v3 = vpack.c.bf16 %v1473_v53, %v1472_v52  ;;  %v1753_v13 = vpack.c.bf16 %v1743_v12, %v1742_v11  ;;  %v1930_v25 = vld [vmem:[#allocation2 + $0x4a] sm:$0xff]  ;;  %2475 = vmatpush3.bf16.msra.mxu0 %v2593_v23 }
  0x5e   : > { %1644 = vrot.lane.b32.xlu1 %v3146_v34, %s2697_s24  ;;  %1766 = vrot.lane.b32.xlu0 %v3208_v27, %s2699_s14  ;;  %v1354_v17 = vrot.slane %v1346_v41, %v2877_v18  ;;  %v1364_v49 = vcombine.low %v1341_v40, %v1345_v36  ;;  %1464 = vst.msk [vmem:[#allocation3] sm:$0xff] %vm1417_vm1, %v1456_v51  ;;  %v2594_v29 = vld [vmem:[%s3501_s6 + $0x8] sm:$0xff]   ;;  %v2595_v32 = vld [vmem:[%s3501_s6 + $0x10] ss:$0 sps:$4 sm:$0x33]  }
  0x5f   : > { %v1361_v55 = vrot.slane %v1347_v42, %v2877_v18  ;;  %v1371_v56 = vrot.slane %v1363_v44, %v2877_v18  ;;  %v1880_v19 = vpack.c.bf16 %v1866_v15, %v1865_v14  ;;  %2499 = vmatpush3.bf16.msra.mxu1 %v2593_v23  ;;  %2476 = vmatprep.subr.bf16.mxu0 %v2594_v29  ;;  %v2061_v8 = vsel %vm2059_vm4, %v2595_v32, 0 }
  0x60   : > { %v1808_v60 = vld [vmem:[#allocation2 + $0xa8] sm:$0xff]  ;;  %v1378_v62 = vrot.slane %v1364_v49, %v2877_v18  ;;  %2497 = vmatprep.subr.bf16.mxu1 %v2594_v29  ;;  %v1945_v30 = vpack.c.bf16 %v1931_v26, %v1930_v25  ;;  %v1616_v28 = vld [vmem:[#allocation2 + $0xc0] sm:$0xff] }
  0x61   : > { %v1809_v0 = vld [vmem:[#allocation2 + $0xb0] sm:$0xff]  ;;  %v1362_v2 = vcombine.low %v1354_v17, %v1361_v55  ;;  %v1537_v18 = vld [vmem:[#allocation2 + $0x2] sm:$0xff]  ;;  %2477 = vmatpush3.bf16.msra.mxu0 %v2594_v29 }
  0x62   : > { %1707 = vrot.lane.b32.xlu1 %v3138_v24, %s2698_s21  ;;  %1830 = vrot.lane.b32.xlu0 %v3067_v43, %s2700_s26  ;;  %v3249_v35 = vpack.c.bf16 %v1809_v0, %v1808_v60  ;;  %v1379_v4 = vcombine.low %v1371_v56, %v1378_v62  ;;  %v1553_v10 = vpack.c.bf16 %v1538_v5, %v1537_v18  ;;  %v1873_v21 = vld [vmem:[#allocation2 + $0xa9] sm:$0xff]  ;;  %v1874_v22 = vld [vmem:[#allocation2 + $0xb1] sm:$0xff]  ;;  %v1681_v39 = vld [vmem:[#allocation2 + $0xc1] sm:$0xff] }
  0x63   : > { %v1382_v6 = vadd.f32 %v1362_v2, %v648_v61  ;;  %2500 = vmatpush3.bf16.msra.mxu1 %v2594_v29  ;;  %2502 = vmatprep.subr.msk.bf16.mxu0 %vm2059_vm4, %v2595_v32  ;;  %v1938_v33 = vld [vmem:[#allocation2 + $0xaa] sm:$0xff]  ;;  %v1939_v20 = vld [vmem:[#allocation2 + $0xb2] sm:$0xff]  ;;  %v1746_v36 = vld [vmem:[#allocation2 + $0xc2] sm:$0xff] }
  0x64   : > { %v1383_v7 = vadd.f32 %v1379_v4, %v649_v1  ;;  %1471 = vst.msk [vmem:[#allocation3 + $0x38] sm:$0xff] %vm1417_vm1, %v3249_v35  ;;  %2503 = vmatprep.subr.msk.bf16.mxu1 %vm2059_vm4, %v2595_v32  ;;  %v1617_v37 = vld [vmem:[#allocation2 + $0xc8] sm:$0xff] }
  0x65   : > { %v1394_v9 = vsel %vm1393_vm3, 0.0, %v1382_v6  ;;  %2479 = vmatpush3.bf16.msra.mxu0 %v2061_v8  ;;  %v1747_v41 = vld [vmem:[#allocation2 + $0xca] sm:$0xff] }
  0x66   : > { %1709 = vrot.lane.b32.xlu1 %v3243_v57, %s2698_s21  ;;  %1504 = vrot.lane.b32.xlu0 %v1488_v3, %s3525_s25  ;;  %v1395_v43 = vsel %vm1393_vm3, 0.0, %v1383_v7  ;;  %1421 = vst.msk [vmem:[#allocation2 + $0xd9] sm:$0xff] %vm1417_vm1, %v1394_v9  ;;  %v1755_v42 = vpack.c.bf16 %v1747_v41, %v1746_v36 }
  0x67   : > { %1422 = vst.msk [vmem:[#allocation2 + $0xe1] sm:$0xff] %vm1417_vm1, %v1395_v43  ;;  %2501 = vmatpush3.bf16.msra.mxu1 %v2061_v8 }
  0x6a   : > { %1772 = vrot.lane.b32.xlu1 %v3174_v54, %s2699_s14  ;;  %1569 = vrot.lane.b32.xlu0 %v1553_v10, %s2696_s15 }
  0x6d   : > { %v1812_v44 = vld [vmem:[#allocation2 + $0xd8] sm:$0xff] }
  0x6e   : > { %1774 = vrot.lane.b32.xlu1 %v1753_v13, %s2699_s14  ;;  %1832 = vrot.lane.b32.xlu0 %v3113_v63, %s2700_s26  ;;  %v1813_v45 = vld [vmem:[#allocation2 + $0xe0] sm:$0xff] }
  0x6f   : > { %v1821_v46 = vpack.c.bf16 %v1813_v45, %v1812_v44  ;;  %v1878_v48 = vld [vmem:[#allocation2 + $0xe1] sm:$0xff] }
  0x70   : > { %v1943_v51 = vld [vmem:[#allocation2 + $0xe2] sm:$0xff] }
  0x72   : > { %1838 = vrot.lane.b32.xlu1 %v3146_v34, %s2700_s26  ;;  %1895 = vrot.lane.b32.xlu0 %v3166_v50, %s2701_s20  ;;  %v1884_v34 = vpack.c.bf16 %v1874_v22, %v1873_v21 }
  0x76   : > { %1840 = vrot.lane.b32.xlu1 %v3249_v35, %s2700_s26  ;;  %1897 = vrot.lane.b32.xlu0 %v1880_v19, %s2701_s20 }
  0x7a   : > { %1903 = vrot.lane.b32.xlu1 %v3243_v57, %s2701_s20  ;;  %1960 = vrot.lane.b32.xlu0 %v3208_v27, %s2702_s22 }
  0x7e   : > { %1905 = vrot.lane.b32.xlu1 %v1884_v34, %s2701_s20  ;;  %1508 = vrot.lane.b32.xlu0 %v3166_v50, %s3525_s25  ;;  %v1949_v50 = vpack.c.bf16 %v1939_v20, %v1938_v33 }
  0x82   : > { %1968 = vrot.lane.b32.xlu1 %v1753_v13, %s2702_s22  ;;  %1962 = vrot.lane.b32.xlu0 %v1945_v30, %s2702_s22 }
  0x86   : > { %1516 = vrot.lane.b32.xlu1 %v3243_v57, %s3525_s25  ;;  %1510 = vrot.lane.b32.xlu0 %v1880_v19, %s3525_s25 }
  0x8a   : > { %1970 = vrot.lane.b32.xlu1 %v1949_v50, %s2702_s22  ;;  %1573 = vrot.lane.b32.xlu0 %v3208_v27, %s2696_s15  ;;  %v1625_v27 = vpack.c.bf16 %v1617_v37, %v1616_v28 }
  0x8e   : > { %1518 = vrot.lane.b32.xlu1 %v1884_v34, %s3525_s25  ;;  %1575 = vrot.lane.b32.xlu0 %v1945_v30, %s2696_s15 }
  0x92   : > { %1581 = vrot.lane.b32.xlu1 %v1753_v13, %s2696_s15  ;;  %1638 = vrot.lane.b32.xlu0 %v3113_v63, %s2697_s24  ;;  %v1682_v63 = vld [vmem:[#allocation2 + $0xc9] sm:$0xff] }
  0x93   : > { %v1690_v40 = vpack.c.bf16 %v1682_v63, %v1681_v39 }
  0x96   : > { %1583 = vrot.lane.b32.xlu1 %v1949_v50, %s2696_s15  ;;  %1640 = vrot.lane.b32.xlu0 %v3177_v58, %s2697_s24 }
  0x9a   : > { %1646 = vrot.lane.b32.xlu1 %v3249_v35, %s2697_s24  ;;  %1703 = vrot.lane.b32.xlu0 %v1880_v19, %s2698_s21 }
  0x9e   : > { %1648 = vrot.lane.b32.xlu1 %v1625_v27, %s2697_s24  ;;  %1705 = vrot.lane.b32.xlu0 %v3037_v16, %s2698_s21  ;;  %s534_s24 = sand.u32 1, %s2666_s28  }
  0x9f   : > { %s2399_s25 = sshll.u32 %s534_s24, 7  ;;  %s3442_s0 = scalar_lea.sflag [#allocation5], %s534_s24 }
  0xa2   : > { %1711 = vrot.lane.b32.xlu1 %v1884_v34, %s2698_s21  ;;  %1768 = vrot.lane.b32.xlu0 %v1945_v30, %s2699_s14 }
  0xa6   : > { %1713 = vrot.lane.b32.xlu1 %v1690_v40, %s2698_s21  ;;  %1770 = vrot.lane.b32.xlu0 %v3151_v38, %s2699_s14 }
  0xaa   : > { %1776 = vrot.lane.b32.xlu1 %v1949_v50, %s2699_s14  ;;  %1834 = vrot.lane.b32.xlu0 %v3177_v58, %s2700_s26 }
  0xae   : > { %1778 = vrot.lane.b32.xlu1 %v1755_v42, %s2699_s14  ;;  %1836 = vrot.lane.b32.xlu0 %v3144_v31, %s2700_s26  ;;  %v1877_v31 = vld [vmem:[#allocation2 + $0xd9] sm:$0xff] }
  0xb2   : > { %1842 = vrot.lane.b32.xlu1 %v1625_v27, %s2700_s26  ;;  %1899 = vrot.lane.b32.xlu0 %v3037_v16, %s2701_s20  ;;  %v1886_v16 = vpack.c.bf16 %v1878_v48, %v1877_v31 }
  0xb4   : > { %v1513_v47 = vpop.permute.xlu0 %1512 }
  0xb5   : > { %1533 = vst.msk [vmem:[#allocation3 + $0x20] sm:$0xff] %vm1528_vm5, %v1513_v47 }
  0xb6   : > { %1844 = vrot.lane.b32.xlu1 %v1821_v46, %s2700_s26  ;;  %1901 = vrot.lane.b32.xlu0 %v3138_v24, %s2701_s20  ;;  %v1942_v24 = vld [vmem:[#allocation2 + $0xda] sm:$0xff]  ;;  %s3412_s26 = scalar_lea.vmem [#allocation4], %s2399_s25  ;;  %s2703_s25 = smov [#allocation4]  }
  0xb7   : > { %v1507_v58 = vpop.permute.xlu1 %1506  ;;  %v1951_v55 = vpack.c.bf16 %v1943_v51, %v1942_v24  ;;  %s2600_s21 = sshll.u32 %s2703_s25, 4  ;;  %s2601_s21 = int_to_ptr.vmem [resolvable:$false] %s2600_s21 }
  0xb8   : > { %1530 = vst.msk [vmem:[#allocation3 + $0x8] sm:$0xff] %vm1528_vm5, %v1507_v58  ;;  %v1572_v17 = vpop.permute.xlu0 %1571  ;;  %s2602_s14 = scalar_lea.vmem %s2601_s21, 4096 }
  0xb9   : > { %1595 = vst.msk [vmem:[#allocation3 + $0x8] sm:$0xff] %vm1593_vm6, %v1572_v17 }
  0xba   : > { %1907 = vrot.lane.b32.xlu1 %v1690_v40, %s2701_s20  ;;  %1964 = vrot.lane.b32.xlu0 %v3151_v38, %s2702_s22 }
  0xbc   : > { %v1635_v49 = vpop.permute.xlu0 %1634 }
  0xbe   : > { %1909 = vrot.lane.b32.xlu1 %v1886_v16, %s2701_s20  ;;  %1966 = vrot.lane.b32.xlu0 %v3174_v54, %s2702_s22  ;;  %s2462_s20 = sshll.u32 %s2674_s30, 4  ;;  %s2194_s30 = sshll.u32 %s3412_s26, 4  ;;  %s3436_s30 = int_to_ptr.vmem [resolvable:$true] %s2194_s30 }
  0xbf   : > { %s2191_s13 = sadd.s32 %s2462_s20, %s2454_s17  ;;  %s2596_s10 = scalar_lea.vmem %s3436_s30, 2048 }
  0xc0   : > { %v1515_v52 = vpop.permute.xlu1 %1514  ;;  %v1637_v53 = vpop.permute.xlu0 %1636  ;;  %p2597_p11 = scmp.ne.s32.totalorder %s3436_s30, %s2596_s10  ;;  %p2603_p0 = scmp.lt.s32.totalorder %s3436_s30, %s2601_s21 }
  0xc1   : > { %1534 = vst.msk [vmem:[#allocation3 + $0x28] sm:$0xff] %vm1528_vm5, %v1515_v52  ;;  %p2604_p1 = scmp.lt.s32.totalorder %s2602_s14, %s2596_s10 }
  0xc2   : > { %1660 = vst.msk [vmem:[#allocation3 + $0x8] sm:$0xff] %vm1658_vm7, %v1637_v53  ;;  %1972 = vrot.lane.b32.xlu1 %v1755_v42, %s2702_s22  ;;  %p2598_p12 = pnand %p2597_p11, %p2801_p3 }
  0xc3   : > { %p2605_p2 = por %p2604_p1, %p2603_p0 }
  0xc4   : > { %v1578_v56 = vpop.permute.xlu1 %1577  ;;  %v1700_v38 = vpop.permute.xlu0 %1699  ;;  %p2599_p13 = pneg %p2598_p12 }
  0xc5   : > { %1598 = vst.msk [vmem:[#allocation3 + $0x20] sm:$0xff] %vm1593_vm6, %v1578_v56 }
  0xc6   : > { %1974 = vrot.lane.b32.xlu1 %v1951_v55, %s2702_s22  ;;  %s2455_s22 = sshll.u32 %s2191_s13, 7  ;;  %p2606_p4 = pnand %p2605_p2, %p2599_p13 }
  0xc7   : > { %s3433_s16 = scalar_lea.hbm %s3503_s8, %s2455_s22 }
  0xc8   : > { %v1580_v54 = vpop.permute.xlu1 %1579  ;;  %v1702_v59 = vpop.permute.xlu0 %1701 }
  0xc9   : > { %1599 = vst.msk [vmem:[#allocation3 + $0x28] sm:$0xff] %vm1593_vm6, %v1580_v54  ;;  %v2439_v54 = vld [vmem:[%s3502_s7] ss:$0 sm:$0xff] }
  0xca   : > { %1725 = vst.msk [vmem:[#allocation3 + $0x8] sm:$0xff] %vm1723_vm8, %v1702_v59 }
  0xcc   : > { %v1643_v60 = vpop.permute.xlu1 %1642  ;;  %v1765_v61 = vpop.permute.xlu0 %1764 }
  0xcd   : > { %1663 = vst.msk [vmem:[#allocation3 + $0x20] sm:$0xff] %vm1658_vm7, %v1643_v60 }
  0xd0   : > { %v1645_v62 = vpop.permute.xlu1 %1644  ;;  %v1767_v57 = vpop.permute.xlu0 %1766 }
  0xd1   : > { %1664 = vst.msk [vmem:[#allocation3 + $0x28] sm:$0xff] %vm1658_vm7, %v1645_v62 }
  0xd2   : > { %1790 = vst.msk [vmem:[#allocation3 + $0x8] sm:$0xff] %vm1788_vm9, %v1767_v57 }
  0xd4   : > { %v1708_v0 = vpop.permute.xlu1 %1707  ;;  %v1831_v1 = vpop.permute.xlu0 %1830 }
  0xd5   : > { %1728 = vst.msk [vmem:[#allocation3 + $0x20] sm:$0xff] %vm1723_vm8, %v1708_v0 }
  0xd8   : > { %v1710_v2 = vpop.permute.xlu1 %1709  ;;  %v1505_v3 = vpop.permute.xlu0 %1504 }
  0xd9   : > { %1729 = vst.msk [vmem:[#allocation3 + $0x28] sm:$0xff] %vm1723_vm8, %v1710_v2 }
  0xda   : > { %1529 = vst.msk [vmem:[#allocation3] sm:$0xff] %vm1528_vm5, %v1505_v3 }
  0xdc   : > { %v1773_v35 = vpop.permute.xlu1 %1772  ;;  %v1570_v4 = vpop.permute.xlu0 %1569 }
  0xdd   : > { %1793 = vst.msk [vmem:[#allocation3 + $0x20] sm:$0xff] %vm1788_vm9, %v1773_v35 }
  0xde   : > { %1594 = vst.msk [vmem:[#allocation3] sm:$0xff] %vm1593_vm6, %v1570_v4 }
  0xdf   : > { %1659 = vst.msk [vmem:[#allocation3] sm:$0xff] %vm1658_vm7, %v1635_v49 }
  0xe0   : > { %1724 = vst.msk [vmem:[#allocation3] sm:$0xff] %vm1723_vm8, %v1700_v38  ;;  %v1775_v18 = vpop.permute.xlu1 %1774  ;;  %v1833_v5 = vpop.permute.xlu0 %1832 }
  0xe1   : > { %1789 = vst.msk [vmem:[#allocation3] sm:$0xff] %vm1788_vm9, %v1765_v61  ;;  %1794 = vst.msk [vmem:[#allocation3 + $0x28] sm:$0xff] %vm1788_vm9, %v1775_v18 }
  0xe2   : > { %1855 = vst.msk [vmem:[#allocation3] sm:$0xff] %vm1854_vm10, %v1831_v1  ;;  %1856 = vst.msk [vmem:[#allocation3 + $0x8] sm:$0xff] %vm1854_vm10, %v1833_v5 }
  0xe4   : > { %v1839_v6 = vpop.permute.xlu1 %1838  ;;  %v1896_v7 = vpop.permute.xlu0 %1895 }
  0xe5   : > { %1859 = vst.msk [vmem:[#allocation3 + $0x20] sm:$0xff] %vm1854_vm10, %v1839_v6 }
  0xe6   : > { %1920 = vst.msk [vmem:[#allocation3] sm:$0xff] %vm1919_vm11, %v1896_v7 }
  0xe8   : > { %v1841_v9 = vpop.permute.xlu1 %1840  ;;  %v1898_v10 = vpop.permute.xlu0 %1897 }
  0xe9   : > { %1860 = vst.msk [vmem:[#allocation3 + $0x28] sm:$0xff] %vm1854_vm10, %v1841_v9 }
  0xea   : > { %1921 = vst.msk [vmem:[#allocation3 + $0x8] sm:$0xff] %vm1919_vm11, %v1898_v10 }
  0xec   : > { %v1904_v43 = vpop.permute.xlu1 %1903  ;;  %v1961_v11 = vpop.permute.xlu0 %1960 }
  0xed   : > { %1924 = vst.msk [vmem:[#allocation3 + $0x20] sm:$0xff] %vm1919_vm11, %v1904_v43 }
  0xee   : > { %1985 = vst.msk [vmem:[#allocation3] sm:$0xff] %vm1984_vm12, %v1961_v11 }
  0xf0   : > { %v1906_v12 = vpop.permute.xlu1 %1905  ;;  %v1509_v13 = vpop.permute.xlu0 %1508 }
  0xf1   : > { %1925 = vst.msk [vmem:[#allocation3 + $0x28] sm:$0xff] %vm1919_vm11, %v1906_v12 }
  0xf2   : > { %1531 = vst.msk [vmem:[#allocation3 + $0x10] sm:$0xff] %vm1528_vm5, %v1509_v13 }
  0xf4   : > { %v1969_v14 = vpop.permute.xlu1 %1968  ;;  %v1963_v15 = vpop.permute.xlu0 %1962 }
  0xf5   : > { %v2005_v19 = vld [vmem:[#allocation3] sm:$0xff]  ;;  %1989 = vst.msk [vmem:[#allocation3 + $0x20] sm:$0xff] %vm1984_vm12, %v1969_v14  ;;  %1986 = vst.msk [vmem:[#allocation3 + $0x8] sm:$0xff] %vm1984_vm12, %v1963_v15 }
  0xf6   : > { %2480 = vmatprep.mubr.msk.bf16.mxu0 %vm2034_vm13, %v2005_v19 }
  0xf8   : > { %v1517_v21 = vpop.permute.xlu1 %1516  ;;  %v1511_v22 = vpop.permute.xlu0 %1510 }
  0xf9   : > { %1535 = vst.msk [vmem:[#allocation3 + $0x30] sm:$0xff] %vm1528_vm5, %v1517_v21  ;;  %1532 = vst.msk [vmem:[#allocation3 + $0x18] sm:$0xff] %vm1528_vm5, %v1511_v22 }
  0xfc   : > { %v1971_v23 = vpop.permute.xlu1 %1970  ;;  %v2009_v34 = vld [vmem:[#allocation3 + $0x20] sm:$0xff]  ;;  %v1574_v25 = vpop.permute.xlu0 %1573  ;;  %v2006_v26 = vld [vmem:[#allocation3 + $0x8] sm:$0xff] }
  0xfd   : > { %1990 = vst.msk [vmem:[#allocation3 + $0x28] sm:$0xff] %vm1984_vm12, %v1971_v23  ;;  %2488 = vmatprep.mubr.msk.bf16.mxu1 %vm2034_vm13, %v2009_v34  ;;  %2481 = vmatmul.mubr.msk.bf16.vlgmr.msra.gmra.mrb[0].mxu0 %vm2034_vm13, %v2006_v26 }
  0xfe   : > { %1596 = vst.msk [vmem:[#allocation3 + $0x10] sm:$0xff] %vm1593_vm6, %v1574_v25 }
 0x100   : > { %v1519_v29 = vpop.permute.xlu1 %1518  ;;  %v1576_v30 = vpop.permute.xlu0 %1575 }
 0x101   : > { %1536 = vst.msk [vmem:[#allocation3 + $0x38] sm:$0xff] %vm1528_vm5, %v1519_v29 }
 0x102   : > { %1597 = vst.msk [vmem:[#allocation3 + $0x18] sm:$0xff] %vm1593_vm6, %v1576_v30 }
 0x104   : > { %v1582_v32 = vpop.permute.xlu1 %1581  ;;  %v2010_v8 = vld [vmem:[#allocation3 + $0x28] sm:$0xff]  ;;  %v1639_v33 = vpop.permute.xlu0 %1638 }
 0x105   : > { %1600 = vst.msk [vmem:[#allocation3 + $0x30] sm:$0xff] %vm1593_vm6, %v1582_v32  ;;  %2489 = vmatmul.mubr.msk.bf16.vlgmr.msra.gmra.mrb[0].mxu1 %vm2034_vm13, %v2010_v8 }
 0x106   : > { %1661 = vst.msk [vmem:[#allocation3 + $0x10] sm:$0xff] %vm1658_vm7, %v1639_v33 }
 0x108   : > { %v1584_v20 = vpop.permute.xlu1 %1583  ;;  %v1641_v50 = vpop.permute.xlu0 %1640 }
 0x109   : > { %1601 = vst.msk [vmem:[#allocation3 + $0x38] sm:$0xff] %vm1593_vm6, %v1584_v20 }
 0x10a   : > { %1662 = vst.msk [vmem:[#allocation3 + $0x18] sm:$0xff] %vm1658_vm7, %v1641_v50 }
 0x10c   : > { %v1647_v28 = vpop.permute.xlu1 %1646  ;;  %v1704_v37 = vpop.permute.xlu0 %1703 }
 0x10d   : > { %1665 = vst.msk [vmem:[#allocation3 + $0x30] sm:$0xff] %vm1658_vm7, %v1647_v28 }
 0x10e   : > { %1726 = vst.msk [vmem:[#allocation3 + $0x10] sm:$0xff] %vm1723_vm8, %v1704_v37 }
 0x110   : > { %v1649_v27 = vpop.permute.xlu1 %1648  ;;  %v1706_v39 = vpop.permute.xlu0 %1705 }
 0x111   : > { %1666 = vst.msk [vmem:[#allocation3 + $0x38] sm:$0xff] %vm1658_vm7, %v1649_v27 }
 0x112   : > { %1727 = vst.msk [vmem:[#allocation3 + $0x18] sm:$0xff] %vm1723_vm8, %v1706_v39 }
 0x114   : > { %v1712_v63 = vpop.permute.xlu1 %1711  ;;  %v1769_v40 = vpop.permute.xlu0 %1768 }
 0x115   : > { %1730 = vst.msk [vmem:[#allocation3 + $0x30] sm:$0xff] %vm1723_vm8, %v1712_v63 }
 0x116   : > { %1791 = vst.msk [vmem:[#allocation3 + $0x10] sm:$0xff] %vm1788_vm9, %v1769_v40 }
 0x118   : > { %v1714_v36 = vpop.permute.xlu1 %1713  ;;  %v1771_v41 = vpop.permute.xlu0 %1770 }
 0x119   : > { %1731 = vst.msk [vmem:[#allocation3 + $0x38] sm:$0xff] %vm1723_vm8, %v1714_v36 }
 0x11a   : > { %1792 = vst.msk [vmem:[#allocation3 + $0x18] sm:$0xff] %vm1788_vm9, %v1771_v41 }
 0x11c   : > { %v1777_v42 = vpop.permute.xlu1 %1776  ;;  %v1835_v44 = vpop.permute.xlu0 %1834 }
 0x11d   : > { %1795 = vst.msk [vmem:[#allocation3 + $0x30] sm:$0xff] %vm1788_vm9, %v1777_v42 }
 0x11e   : > { %1857 = vst.msk [vmem:[#allocation3 + $0x10] sm:$0xff] %vm1854_vm10, %v1835_v44 }
 0x120   : > { %v1779_v45 = vpop.permute.xlu1 %1778  ;;  %v1837_v46 = vpop.permute.xlu0 %1836 }
 0x121   : > { %1796 = vst.msk [vmem:[#allocation3 + $0x38] sm:$0xff] %vm1788_vm9, %v1779_v45 }
 0x122   : > { %1858 = vst.msk [vmem:[#allocation3 + $0x18] sm:$0xff] %vm1854_vm10, %v1837_v46 }
 0x124   : > { %v1843_v47 = vpop.permute.xlu1 %1842  ;;  %v1900_v58 = vpop.permute.xlu0 %1899 }
 0x125   : > { %1861 = vst.msk [vmem:[#allocation3 + $0x30] sm:$0xff] %vm1854_vm10, %v1843_v47 }
 0x126   : > { %1922 = vst.msk [vmem:[#allocation3 + $0x10] sm:$0xff] %vm1919_vm11, %v1900_v58 }
 0x128   : > { %v1845_v31 = vpop.permute.xlu1 %1844  ;;  %v1902_v48 = vpop.permute.xlu0 %1901 }
 0x129   : > { %1862 = vst.msk [vmem:[#allocation3 + $0x38] sm:$0xff] %vm1854_vm10, %v1845_v31 }
 0x12a   : > { %1923 = vst.msk [vmem:[#allocation3 + $0x18] sm:$0xff] %vm1919_vm11, %v1902_v48 }
 0x12c   : > { %v1908_v17 = vpop.permute.xlu1 %1907  ;;  %v1965_v16 = vpop.permute.xlu0 %1964 }
 0x12d   : > { %1926 = vst.msk [vmem:[#allocation3 + $0x30] sm:$0xff] %vm1919_vm11, %v1908_v17 }
 0x12e   : > { %1987 = vst.msk [vmem:[#allocation3 + $0x10] sm:$0xff] %vm1984_vm12, %v1965_v16 }
 0x130   : > { %v1910_v49 = vpop.permute.xlu1 %1909  ;;  %v1967_v24 = vpop.permute.xlu0 %1966 }
 0x131   : > { %1927 = vst.msk [vmem:[#allocation3 + $0x38] sm:$0xff] %vm1919_vm11, %v1910_v49 }
 0x132   : > { %1988 = vst.msk [vmem:[#allocation3 + $0x18] sm:$0xff] %vm1984_vm12, %v1967_v24 }
 0x134   : > { %v1973_v51 = vpop.permute.xlu1 %1972 }
 0x135   : > { %v2007_v52 = vld [vmem:[#allocation3 + $0x10] sm:$0xff]  ;;  %1991 = vst.msk [vmem:[#allocation3 + $0x30] sm:$0xff] %vm1984_vm12, %v1973_v51 }
 0x136   : > { %2484 = vmatprep.mubr.msk.bf16.mxu0 %vm2034_vm13, %v2007_v52 }
 0x138   : > { %v1975_v53 = vpop.permute.xlu1 %1974 }
 0x139   : > { %v2008_v55 = vld [vmem:[#allocation3 + $0x18] sm:$0xff]  ;;  %1992 = vst.msk [vmem:[#allocation3 + $0x38] sm:$0xff] %vm1984_vm12, %v1975_v53 }
 0x13a   : > { %2485 = vmatmul.mubr.msk.bf16.gmra.mrb[4].mxu0 %vm2034_vm13, %v2008_v55 }
 0x13c   : > { %v2011_v56 = vld [vmem:[#allocation3 + $0x30] sm:$0xff] }
 0x13d   : > { %2492 = vmatprep.mubr.msk.bf16.mxu1 %vm2034_vm13, %v2011_v56 }
 0x140   : > { %v2012_v38 = vld [vmem:[#allocation3 + $0x38] sm:$0xff] }
 0x141   : > { %2493 = vmatmul.mubr.msk.bf16.gmra.mrb[4].mxu1 %vm2034_vm13, %v2012_v38 }
 0x1d0   : > { %v2482_v59 = vpop.f32.mrb[0].mxu0 }
 0x1d1   : > { %v2106_v60 = vadd.f32 %v2482_v59, %v2439_v54  ;;  %v2097_v61 = vpop.f32.mrb[1].mxu0 }
 0x1d2   : > { %v2098_v62 = vadd.f32 %v2439_v54, %v2097_v61  ;;  %v2483_v57 = vpop.f32.mrb[2].mxu0 }
 0x1d3   : > { %2162 = vst [vmem:[%s3412_s26 + $0x10] sm:$0xff] %v2106_v60  ;;  %v2109_v0 = vadd.f32 %v2483_v57, %v2439_v54  ;;  %v2100_v1 = vpop.f32.mrb[3].mxu0 }
 0x1d4   : > { %2160 = vst [vmem:[%s3412_s26] sm:$0xff] %v2098_v62  ;;  %v2101_v2 = vadd.f32 %v2439_v54, %v2100_v1 }
 0x1d5   : > { %2163 = vst [vmem:[%s3412_s26 + $0x18] sm:$0xff] %v2109_v0 }
 0x1d6   : > { %2161 = vst [vmem:[%s3412_s26 + $0x8] sm:$0xff] %v2101_v2 }
 0x1d8   : > { %v2490_v3 = vpop.f32.mrb[0].mxu1 }
 0x1d9   : > { %v2138_v35 = vadd.f32 %v2490_v3, %v2439_v54  ;;  %v2129_v4 = vpop.f32.mrb[1].mxu1 }
 0x1da   : > { %v2130_v18 = vadd.f32 %v2439_v54, %v2129_v4  ;;  %v2491_v5 = vpop.f32.mrb[2].mxu1 }
 0x1db   : > { %2170 = vst [vmem:[%s3412_s26 + $0x50] sm:$0xff] %v2138_v35  ;;  %v2141_v6 = vadd.f32 %v2491_v5, %v2439_v54  ;;  %v2132_v7 = vpop.f32.mrb[3].mxu1 }
 0x1dc   : > { %2168 = vst [vmem:[%s3412_s26 + $0x40] sm:$0xff] %v2130_v18  ;;  %v2133_v9 = vadd.f32 %v2439_v54, %v2132_v7 }
 0x1dd   : > { %2171 = vst [vmem:[%s3412_s26 + $0x58] sm:$0xff] %v2141_v6 }
 0x1de   : > { %2169 = vst [vmem:[%s3412_s26 + $0x48] sm:$0xff] %v2133_v9 }
 0x20d   : > { %v2486_v10 = vpop.f32.mrb[4].mxu0 }
 0x20e   : > { %v2122_v43 = vadd.f32 %v2486_v10, %v2439_v54  ;;  %v2113_v11 = vpop.f32.mrb[5].mxu0 }
 0x20f   : > { %v2114_v12 = vadd.f32 %v2439_v54, %v2113_v11  ;;  %v2487_v13 = vpop.f32.mrb[6].mxu0 }
 0x210   : > { %2166 = vst [vmem:[%s3412_s26 + $0x30] sm:$0xff] %v2122_v43  ;;  %v2125_v14 = vadd.f32 %v2487_v13, %v2439_v54  ;;  %v2116_v15 = vpop.f32.mrb[7].mxu0 }
 0x211   : > { %2164 = vst [vmem:[%s3412_s26 + $0x20] sm:$0xff] %v2114_v12  ;;  %v2117_v19 = vadd.f32 %v2439_v54, %v2116_v15 }
 0x212   : > { %2167 = vst [vmem:[%s3412_s26 + $0x38] sm:$0xff] %v2125_v14 }
 0x213   : > { %2165 = vst [vmem:[%s3412_s26 + $0x28] sm:$0xff] %v2117_v19 }
 0x214   : > { %v2494_v21 = vpop.f32.mrb[4].mxu1 }
 0x215   : > { %v2154_v22 = vadd.f32 %v2494_v21, %v2439_v54  ;;  %v2145_v23 = vpop.f32.mrb[5].mxu1 }
 0x216   : > { %v2146_v34 = vadd.f32 %v2439_v54, %v2145_v23  ;;  %v2495_v25 = vpop.f32.mrb[6].mxu1 }
 0x217   : > { %2174 = vst [vmem:[%s3412_s26 + $0x70] sm:$0xff] %v2154_v22  ;;  %v2157_v26 = vadd.f32 %v2495_v25, %v2439_v54  ;;  %v2148_v29 = vpop.f32.mrb[7].mxu1 }
 0x218   : > { %2172 = vst [vmem:[%s3412_s26 + $0x60] sm:$0xff] %v2146_v34  ;;  %v2149_v30 = vadd.f32 %v2439_v54, %v2148_v29 }
 0x219   : > { %2175 = vst [vmem:[%s3412_s26 + $0x78] sm:$0xff] %v2157_v26 }
 0x21a   : > { %2173 = vst [vmem:[%s3412_s26 + $0x68] sm:$0xff] %v2149_v30 }
 0x21b   : > { %2609 = shalt.err (!%p2606_p4)
}
 0x21c   : > { %s2610_s24 = scalar_lea.hbm %s3433_s16, 2048  ;;  %s2614_s17 = scalar_lea.hbm %s3503_s8, 8192 }
 0x21d   : > { %p2611_p5 = scmp.ne.s32.totalorder %s3433_s16, %s2610_s24  ;;  %p2615_p9 = scmp.lt.u32.totalorder %s3433_s16, %s3503_s8 }
 0x21e   : > { %p2616_p10 = scmp.lt.u32.totalorder %s2614_s17, %s2610_s24  ;;  %p2618_p12 = scmp.lt.u32.totalorder %s2610_s24, %s3433_s16 }
 0x21f   : > { %p2612_p6 = pnand %p2611_p5, %p2801_p3 }
 0x220   : > { %p2617_p11 = por %p2616_p10, %p2615_p9 }
 0x221   : > { %p2613_p7 = pneg %p2612_p6 }
 0x222   : > { %p2619_p13 = por %p2618_p12, %p2617_p11 }
 0x224   : > { %p2620_p0 = pnand %p2619_p13, %p2613_p7 }
 0x226   : > { %2623 = shalt.err (!%p2620_p0)
}
 0x227   : > { %s2704_s9 = smov 128  }
 0x228   : > { %2504 = dma.vmem_to_hbm [thread:$0]  (%p2801_p3), %s3436_s30, 2048, %s3433_s16, %s3442_s0, %s2704_s9, %s2704_s9, %s2696_s15  }
 0x229 PF: > { %p2510_p1 = scmp.ge.s32.totalorder %s2690_s12, 2  ;;  %s2209_s11 = sand.u32 1, %s2662_s27  }
 0x22a   : > { %s2210_s10 = scalar_lea.sflag [#allocation5], %s2209_s11 }
 0x22b   : > { %p2507_p2 = pnand %p2510_p1, %p2810_p8 }
 0x22d   : > { %2657 = dma.done.wait (!%p2507_p2), %s2210_s10, 2048  }
 0x22e   : > { %2659 = vsyncadd (!%p2507_p2), %s2210_s10, 4294965248  ;;  %s21_s12 = sadd.s32 1, %s2690_s12   ;;  %s3526_s30 = sld [smem:[#allocation7_spill]] }
 0x22f   : > { %p18_p4 = scmp.ge.s32.totalorder %s21_s12, 6   ;;  %s3527_s9 = sld [smem:[#allocation8_spill]] }
 0x230   : > { %s3528_s10 = sld [smem:[#allocation9_spill]]  ;;  %s3529_s11 = sld [smem:[#allocation10_spill]] }
 0x231   : > { %s3530_s27 = smov %s2666_s28  ;;  %s3531_s28 = smov %s2670_s29 }
 0x232   : > { %s3532_s29 = smov %s2819_s23  ;;  %20 = sbr.rel (!%p18_p4) target bundleno = 7 (0x7), region = 111 }
 0x239   :  { %2215 = vsyncpa [#allocation5], 1 }
 0x23a   :  { %2217 = vsyncpa [#allocation5 + $0x1], 1 }

</bundles_post_ra>
